<compile_context>
chip_gen: v7x
topology: tpu7x:2x2x1
jax: 0.10.0
libtpu: 0.0.40
codegen_flags: <defaults>
</compile_context>

<pallas_src>
import math

import jax
import jax.numpy as jnp
from jax import lax
from jax.experimental import pallas as pl
from jax.experimental.pallas import tpu as pltpu


# --------------------------------------------------------------------------
# Fused Pallas kernel: ALL layers, whole sequence, one call.
# --------------------------------------------------------------------------
def _make_stacked_kernel(num_layers, T, B, H):
    H4 = 4 * H

    def kernel(*refs):
        # Input refs:
        #   refs[0]                    x        (T, B, D)        f32
        #   per layer l (5 refs):      zx_cat   (B, 4*Din_l)     f32
        #                              w_blk    (4*Din_l, 4H)    bf16 block-diag
        #                              bias     (1, 4H)          f32  (wb + ub)
        #                              zh_cat   (B, 4H)          f32
        #                              u_blk    (4H, 4H)         bf16 block-diag
        #   h0 (B, H), c0 (B, H)
        # Output refs: hn (T, B, H), h_n (L, B, H), c_n (L, B, H)
        # Scratch:     pre_ref (T, B, 4H) f32, hbuf (T, B, H) f32
        x_ref = refs[0]
        idx = 1
        layer_refs = refs[idx:idx + 5 * num_layers]
        idx += 5 * num_layers
        h0_ref, c0_ref = refs[idx], refs[idx + 1]
        idx += 2
        hn_ref, hN_ref, cN_ref = refs[idx], refs[idx + 1], refs[idx + 2]
        idx += 3
        pre_ref, hbuf_ref = refs[idx], refs[idx + 1]

        # Lane-constant activation coefficients, built ONCE (hoisted out of the
        # time loop, full (B, 4H) shape so the loop body has no broadcasts):
        #   sigmoid lanes (i|f|o): act = 0.5 + 0.5 * tanh(0.5 * pre)
        #   tanh lanes    (g)    : act = tanh(pre)
        lane = lax.broadcasted_iota(jnp.int32, (B, H4), 1)
        is_sig = lane < 3 * H
        a_scale = jnp.where(is_sig, 0.5, 1.0).astype(jnp.float32)
        a_mul = a_scale
        a_add = jnp.where(is_sig, 0.5, 0.0).astype(jnp.float32)

        h = h0_ref[...].astype(jnp.float32)
        c = c0_ref[...].astype(jnp.float32)
        unroll = min(T, 8)  # capped unroll: LLO visibility without blow-up at long T

        for l in range(num_layers):
            zx_ref, w_ref, b_ref, zh_ref, u_ref = layer_refs[5 * l:5 * l + 5]

            # Layer input sequence: x for layer 0, previous layer's hidden
            # sequence (VMEM-resident scratch) for layers > 0.
            src_ref = x_ref if l == 0 else hbuf_ref
            seq = src_ref[...].astype(jnp.float32)               # (T, B, Din)
            din = seq.shape[-1]

            # Input projection for ALL timesteps in one MXU matmul:
            #   LHS = [x*zx_i | x*zx_f | x*zx_o | x*zx_g]  (T*B, 4*Din)
            #   RHS = block-diag(Wi, Wf, Wo, Wg)           (4*Din, 4H)
            lhs = jnp.concatenate([seq] * 4, axis=-1) * zx_ref[...][None]
            pre_all = jnp.dot(
                lhs.reshape(T * B, 4 * din).astype(jnp.bfloat16), w_ref[...],
                preferred_element_type=jnp.float32)
            pre_ref[...] = (pre_all + b_ref[...]).reshape(T, B, H4)

            zh = zh_ref[...]                                     # (B, 4H) f32
            u_blk = u_ref[...]                                   # (4H, 4H) bf16
            out_ref = hn_ref if l == num_layers - 1 else hbuf_ref

            def step(t, carry):
                h_t, c_t = carry                                 # (B, H) f32
                # Fused recurrent projection of all 4 gates: one lane-dense MXU op.
                hz = jnp.concatenate([h_t] * 4, axis=-1) * zh    # (B, 4H)
                rec = jnp.dot(hz.astype(jnp.bfloat16), u_blk,
                              preferred_element_type=jnp.float32)
                pre = pre_ref[t] + rec                           # (B, 4H)
                # One EUP tanh + 2 VPU FMAs for all 4 gate activations.
                act = jnp.tanh(pre * a_scale) * a_mul + a_add
                i = act[:, 0 * H:1 * H]
                f = act[:, 1 * H:2 * H]
                o = act[:, 2 * H:3 * H]
                g = act[:, 3 * H:4 * H]
                c_new = f * c_t + i * g
                h_new = o * jnp.tanh(c_new)
                out_ref[t] = h_new.astype(out_ref.dtype)
                return h_new, c_new

            # Per StochasticLSTM.forward, layer l+1's initial state is layer l's
            # final state, so (h, c) chain across the layer loop.
            h, c = lax.fori_loop(0, T, step, (h, c), unroll=unroll)
            hN_ref[l] = h.astype(hN_ref.dtype)
            cN_ref[l] = c.astype(cN_ref.dtype)

    return kernel


def _stacked_lstm_call(num_layers, x, flat_layer_args, h0, c0):
    T, B, _ = x.shape
    H = h0.shape[-1]
    n_in = 1 + 5 * num_layers + 2
    return pl.pallas_call(
        _make_stacked_kernel(num_layers, T, B, H),
        out_shape=(
            jax.ShapeDtypeStruct((T, B, H), x.dtype),                 # hn (last layer)
            jax.ShapeDtypeStruct((num_layers, B, H), x.dtype),        # h_n
            jax.ShapeDtypeStruct((num_layers, B, H), x.dtype),        # c_n
        ),
        in_specs=[pl.BlockSpec(memory_space=pltpu.MemorySpace.VMEM)] * n_in,
        out_specs=(pl.BlockSpec(memory_space=pltpu.MemorySpace.VMEM),) * 3,
        scratch_shapes=[
            pltpu.VMEM((T, B, 4 * H), jnp.float32),   # pre-activations (one layer)
            pltpu.VMEM((T, B, H), jnp.float32),       # intermediate layer outputs
        ],
    )(x, *flat_layer_args, h0, c0)


# --------------------------------------------------------------------------
# Plain-JAX glue: params, masks, block-diagonal packing, layer stacking.
# --------------------------------------------------------------------------
def _block_diag_gates(M):
    """(4, R, C) per-gate matrices -> (4R, 4C) block-diagonal, gate order [i|f|o|g]."""
    G, R, C = M.shape
    out = jnp.zeros((G * R, G * C), dtype=M.dtype)
    for g in range(G):
        out = out.at[g * R:(g + 1) * R, g * C:(g + 1) * C].set(M[g])
    return out


def init_cell_params(key, input_size, hidden_size):
    """Matches StochasticLSTMCell.init_weights: uniform(-k, k), k = 1/sqrt(H)."""
    k = 1.0 / math.sqrt(hidden_size)
    keys = jax.random.split(key, 4)
    # Stacked weights in gate order (i, f, o, g); stored pre-transposed (Din/H, H).
    W = jax.random.uniform(keys[0], (4, input_size, hidden_size),
                           minval=-k, maxval=k, dtype=jnp.float32)
    wb = jax.random.uniform(keys[1], (4, 1, hidden_size),
                            minval=-k, maxval=k, dtype=jnp.float32)
    U = jax.random.uniform(keys[2], (4, hidden_size, hidden_size),
                           minval=-k, maxval=k, dtype=jnp.float32)
    ub = jax.random.uniform(keys[3], (4, 1, hidden_size),
                            minval=-k, maxval=k, dtype=jnp.float32)
    return dict(W=W, wb=wb, U=U, ub=ub)


def sample_masks(key, p, B, input_size, hidden_size):
    """Matches StochasticLSTMCell._sample_mask (relaxed-Bernoulli masks)."""
    eps = 1e-7
    temp = 0.1
    kx, kh = jax.random.split(key)
    ux = jax.random.uniform(kx, (4, B, input_size), dtype=jnp.float32)
    uh = jax.random.uniform(kh, (4, B, hidden_size), dtype=jnp.float32)
    if input_size == 1:
        zx = 1.0 - jax.nn.sigmoid(
            (jnp.log(eps) - jnp.log(1.0 + eps)
             + jnp.log(ux + eps) - jnp.log(1.0 - ux + eps)) / temp)
    else:
        zx = (1.0 - jax.nn.sigmoid(
            (jnp.log(p + eps) - jnp.log(1.0 - p + eps)
             + jnp.log(ux + eps) - jnp.log(1.0 - ux + eps)) / temp)) / (1.0 - p)
    zh = (1.0 - jax.nn.sigmoid(
        (jnp.log(p + eps) - jnp.log(1.0 - p + eps)
         + jnp.log(uh + eps) - jnp.log(1.0 - uh + eps)) / temp)) / (1.0 - p)
    return zx, zh


@jax.jit
def stochastic_lstm_forward(params, x, mask_key, hx=None):
    """StochasticLSTM.forward: stacked cells, returns (outputs, (h_n, c_n))."""
    T, B, _ = x.shape
    layers = params["layers"]
    L = len(layers)
    H = layers[0]["U"].shape[-1]

    if hx is None:
        h0 = jnp.zeros((B, H), dtype=x.dtype)
        c0 = jnp.zeros((B, H), dtype=x.dtype)
    else:
        h0, c0 = hx

    keys = jax.random.split(mask_key, L)
    flat_args = []
    for li, layer in enumerate(layers):
        p = jax.nn.sigmoid(layer["p_logit"])
        din = layer["W"].shape[1]
        zx, zh = sample_masks(keys[li], p, B, din, H)
        zx_cat = zx.transpose(1, 0, 2).reshape(B, 4 * din)           # (B, 4*Din)
        zh_cat = zh.transpose(1, 0, 2).reshape(B, 4 * H)             # (B, 4H)
        w_blk = _block_diag_gates(layer["W"]).astype(jnp.bfloat16)   # (4*Din, 4H)
        u_blk = _block_diag_gates(layer["U"]).astype(jnp.bfloat16)   # (4H, 4H)
        bias = (layer["wb"] + layer["ub"]).transpose(1, 0, 2).reshape(1, 4 * H)
        flat_args += [zx_cat, w_blk, bias, zh_cat, u_blk]

    hn, h_n, c_n = _stacked_lstm_call(L, x, flat_args, h0, c0)
    return hn, (h_n, c_n)


# --------------------------------------------------------------------------
# Main
# --------------------------------------------------------------------------
if __name__ == "__main__":
    # Small shapes consistent with the module's forward:
    # input (T=8, B=2, input_size=16), hidden_size=32, num_layers=2.
    T, B, D, H = 8, 2, 16, 32
    NUM_LAYERS = 2

    root = jax.random.PRNGKey(0)
    k_x, k_p0, k_l0, k_p1, k_l1, k_mask = jax.random.split(root, 6)

    x = jax.random.normal(k_x, (T, B, D), dtype=jnp.float32)

    # dropout=None path -> p_logit is a learnable scalar initialized ~ N(0,1).
    layer0 = init_cell_params(k_l0, D, H)
    layer0["p_logit"] = jax.random.normal(k_p0, (), dtype=jnp.float32)
    layer1 = init_cell_params(k_l1, H, H)
    layer1["p_logit"] = jax.random.normal(k_p1, (), dtype=jnp.float32)

    params = dict(layers=[layer0, layer1][:NUM_LAYERS])

    outputs, (h_n, c_n) = stochastic_lstm_forward(params, x, k_mask)
    jax.block_until_ready((outputs, h_n, c_n))

    assert outputs.shape == (T, B, H)
    assert h_n.shape == (NUM_LAYERS, B, H)
    assert c_n.shape == (NUM_LAYERS, B, H)
    assert bool(jnp.all(jnp.isfinite(outputs)))
    assert bool(jnp.all(jnp.isfinite(h_n)))
    assert bool(jnp.all(jnp.isfinite(c_n)))
    # outputs[-1] must equal the last layer's final hidden state.
    assert bool(jnp.allclose(outputs[-1], h_n[-1], atol=1e-5))

    print("KERNEL_OK")
</pallas_src>

<mosaic_0001>
module attributes {stable_mosaic.version = 11 : i64} {
  func.func @kernel(%arg0: memref<8x2x16xf32, #tpu.memory_space<vmem>>, %arg1: memref<2x64xf32, #tpu.memory_space<vmem>>, %arg2: memref<64x128xbf16, #tpu.memory_space<vmem>>, %arg3: memref<1x128xf32, #tpu.memory_space<vmem>>, %arg4: memref<2x128xf32, #tpu.memory_space<vmem>>, %arg5: memref<128x128xbf16, #tpu.memory_space<vmem>>, %arg6: memref<2x128xf32, #tpu.memory_space<vmem>>, %arg7: memref<128x128xbf16, #tpu.memory_space<vmem>>, %arg8: memref<1x128xf32, #tpu.memory_space<vmem>>, %arg9: memref<2x128xf32, #tpu.memory_space<vmem>>, %arg10: memref<128x128xbf16, #tpu.memory_space<vmem>>, %arg11: memref<2x32xf32, #tpu.memory_space<vmem>>, %arg12: memref<2x32xf32, #tpu.memory_space<vmem>>, %arg13: memref<8x2x32xf32, #tpu.memory_space<vmem>>, %arg14: memref<2x2x32xf32, #tpu.memory_space<vmem>>, %arg15: memref<2x2x32xf32, #tpu.memory_space<vmem>>, %arg16: memref<8x2x128xf32, #tpu.memory_space<vmem>>, %arg17: memref<8x2x32xf32, #tpu.memory_space<vmem>>) attributes {dimension_semantics = [], scalar_prefetch = 0 : i64, scratch_operands = 2 : i64, tpu.core_type = #tpu.core_type<tc>} {
    %0 = tpu.iota {dimensions = array<i32: 1>} : vector<2x128xi32>
    %c96_i32 = arith.constant 96 : i32
    %1 = vector.broadcast %c96_i32 : i32 to vector<2x128xi32>
    %2 = arith.cmpi slt, %0, %1 : vector<2x128xi32>
    %cst = arith.constant 5.000000e-01 : f32
    %cst_0 = arith.constant 1.000000e+00 : f32
    %3 = vector.broadcast %cst : f32 to vector<2x128xf32>
    %4 = vector.broadcast %cst_0 : f32 to vector<2x128xf32>
    %5 = arith.select %2, %3, %4 : vector<2x128xi1>, vector<2x128xf32>
    %cst_1 = arith.constant 5.000000e-01 : f32
    %cst_2 = arith.constant 0.000000e+00 : f32
    %6 = vector.broadcast %cst_1 : f32 to vector<2x128xf32>
    %7 = vector.broadcast %cst_2 : f32 to vector<2x128xf32>
    %8 = arith.select %2, %6, %7 : vector<2x128xi1>, vector<2x128xf32>
    %c0 = arith.constant 0 : index
    %c0_3 = arith.constant 0 : index
    %9 = vector.load %arg11[%c0, %c0_3] : memref<2x32xf32, #tpu.memory_space<vmem>>, vector<2x32xf32>
    %c0_4 = arith.constant 0 : index
    %c0_5 = arith.constant 0 : index
    %10 = vector.load %arg12[%c0_4, %c0_5] : memref<2x32xf32, #tpu.memory_space<vmem>>, vector<2x32xf32>
    %c0_6 = arith.constant 0 : index
    %c0_7 = arith.constant 0 : index
    %c0_8 = arith.constant 0 : index
    %11 = vector.load %arg0[%c0_6, %c0_7, %c0_8] : memref<8x2x16xf32, #tpu.memory_space<vmem>>, vector<8x2x16xf32>
    %12 = tpu.concatenate %11, %11, %11, %11 in 2 : vector<8x2x16xf32>, vector<8x2x16xf32>, vector<8x2x16xf32>, vector<8x2x16xf32> -> vector<8x2x64xf32>
    %c0_9 = arith.constant 0 : index
    %c0_10 = arith.constant 0 : index
    %13 = vector.load %arg1[%c0_9, %c0_10] : memref<2x64xf32, #tpu.memory_space<vmem>>, vector<2x64xf32>
    %14 = vector.shape_cast %13 : vector<2x64xf32> to vector<1x2x64xf32>
    %15 = vector.broadcast %14 : vector<1x2x64xf32> to vector<8x2x64xf32>
    %16 = arith.mulf %12, %15 : vector<8x2x64xf32>
    %17 = vector.shape_cast %16 : vector<8x2x64xf32> to vector<16x64xf32>
    %18 = arith.truncf %17 : vector<16x64xf32> to vector<16x64xbf16>
    %c0_11 = arith.constant 0 : index
    %c0_12 = arith.constant 0 : index
    %19 = vector.load %arg2[%c0_11, %c0_12] : memref<64x128xbf16, #tpu.memory_space<vmem>>, vector<64x128xbf16>
    %cst_13 = arith.constant dense<0.000000e+00> : vector<16x128xf32>
    %20 = tpu.matmul %18, %19, %cst_13 {dimension_numbers = #tpu.dot_dimension_numbers<[1], [0], [0], [1], [0, 0, 1, 1], [], []>} : vector<16x64xbf16>, vector<64x128xbf16>, vector<16x128xf32> -> vector<16x128xf32>
    %c0_14 = arith.constant 0 : index
    %c0_15 = arith.constant 0 : index
    %21 = vector.load %arg3[%c0_14, %c0_15] : memref<1x128xf32, #tpu.memory_space<vmem>>, vector<1x128xf32>
    %22 = vector.broadcast %21 : vector<1x128xf32> to vector<16x128xf32>
    %23 = arith.addf %20, %22 : vector<16x128xf32>
    %24 = vector.shape_cast %23 : vector<16x128xf32> to vector<8x2x128xf32>
    %c0_16 = arith.constant 0 : index
    %c0_17 = arith.constant 0 : index
    %c0_18 = arith.constant 0 : index
    %25 = vector.load %arg16[%c0_16, %c0_17, %c0_18] : memref<8x2x128xf32, #tpu.memory_space<vmem>>, vector<8x2x128xf32>
    tpu.vector_store %arg16[%c0_16, %c0_17, %c0_18], %24 {strides = array<i32>} : memref<8x2x128xf32, #tpu.memory_space<vmem>>, vector<8x2x128xf32>,
    %c0_19 = arith.constant 0 : index
    %c0_20 = arith.constant 0 : index
    %26 = vector.load %arg4[%c0_19, %c0_20] : memref<2x128xf32, #tpu.memory_space<vmem>>, vector<2x128xf32>
    %c0_21 = arith.constant 0 : index
    %c0_22 = arith.constant 0 : index
    %27 = vector.load %arg5[%c0_21, %c0_22] : memref<128x128xbf16, #tpu.memory_space<vmem>>, vector<128x128xbf16>
    %c0_i32 = arith.constant 0 : i32
    %28 = tpu.concatenate %9, %9, %9, %9 in 1 : vector<2x32xf32>, vector<2x32xf32>, vector<2x32xf32>, vector<2x32xf32> -> vector<2x128xf32>
    %29 = arith.mulf %28, %26 : vector<2x128xf32>
    %30 = arith.truncf %29 : vector<2x128xf32> to vector<2x128xbf16>
    %cst_23 = arith.constant dense<0.000000e+00> : vector<2x128xf32>
    %31 = tpu.matmul %30, %27, %cst_23 {dimension_numbers = #tpu.dot_dimension_numbers<[1], [0], [0], [1], [0, 0, 1, 1], [], []>} : vector<2x128xbf16>, vector<128x128xbf16>, vector<2x128xf32> -> vector<2x128xf32>
    %32 = arith.index_cast %c0_i32 : i32 to index
    %c0_24 = arith.constant 0 : index
    %c0_25 = arith.constant 0 : index
    %33 = vector.load %arg16[%32, %c0_24, %c0_25] : memref<8x2x128xf32, #tpu.memory_space<vmem>>, vector<1x2x128xf32>
    %34 = vector.shape_cast %33 : vector<1x2x128xf32> to vector<2x128xf32>
    %35 = arith.addf %34, %31 : vector<2x128xf32>
    %36 = arith.mulf %35, %5 : vector<2x128xf32>
    %37 = math.tanh %36 : vector<2x128xf32>
    %38 = arith.mulf %37, %5 : vector<2x128xf32>
    %39 = arith.addf %38, %8 : vector<2x128xf32>
    %40 = vector.extract_strided_slice %39 {offsets = [0, 0], sizes = [2, 32], strides = [1, 1]} : vector<2x128xf32> to vector<2x32xf32>
    %41 = vector.extract_strided_slice %39 {offsets = [0, 32], sizes = [2, 32], strides = [1, 1]} : vector<2x128xf32> to vector<2x32xf32>
    %42 = vector.extract_strided_slice %39 {offsets = [0, 64], sizes = [2, 32], strides = [1, 1]} : vector<2x128xf32> to vector<2x32xf32>
    %43 = vector.extract_strided_slice %39 {offsets = [0, 96], sizes = [2, 32], strides = [1, 1]} : vector<2x128xf32> to vector<2x32xf32>
    %44 = arith.mulf %41, %10 : vector<2x32xf32>
    %45 = arith.mulf %40, %43 : vector<2x32xf32>
    %46 = arith.addf %44, %45 : vector<2x32xf32>
    %47 = math.tanh %46 : vector<2x32xf32>
    %48 = arith.mulf %42, %47 : vector<2x32xf32>
    %49 = arith.index_cast %c0_i32 : i32 to index
    %c0_26 = arith.constant 0 : index
    %c0_27 = arith.constant 0 : index
    %50 = vector.load %arg17[%49, %c0_26, %c0_27] : memref<8x2x32xf32, #tpu.memory_space<vmem>>, vector<1x2x32xf32>
    %51 = vector.shape_cast %50 : vector<1x2x32xf32> to vector<2x32xf32>
    %52 = vector.shape_cast %48 : vector<2x32xf32> to vector<1x2x32xf32>
    tpu.vector_store %arg17[%49, %c0_26, %c0_27], %52 {strides = array<i32>} : memref<8x2x32xf32, #tpu.memory_space<vmem>>, vector<1x2x32xf32>,
    %c1_i32 = arith.constant 1 : i32
    %53 = tpu.concatenate %48, %48, %48, %48 in 1 : vector<2x32xf32>, vector<2x32xf32>, vector<2x32xf32>, vector<2x32xf32> -> vector<2x128xf32>
    %54 = arith.mulf %53, %26 : vector<2x128xf32>
    %55 = arith.truncf %54 : vector<2x128xf32> to vector<2x128xbf16>
    %cst_28 = arith.constant dense<0.000000e+00> : vector<2x128xf32>
    %56 = tpu.matmul %55, %27, %cst_28 {dimension_numbers = #tpu.dot_dimension_numbers<[1], [0], [0], [1], [0, 0, 1, 1], [], []>} : vector<2x128xbf16>, vector<128x128xbf16>, vector<2x128xf32> -> vector<2x128xf32>
    %57 = arith.index_cast %c1_i32 : i32 to index
    %c0_29 = arith.constant 0 : index
    %c0_30 = arith.constant 0 : index
    %58 = vector.load %arg16[%57, %c0_29, %c0_30] : memref<8x2x128xf32, #tpu.memory_space<vmem>>, vector<1x2x128xf32>
    %59 = vector.shape_cast %58 : vector<1x2x128xf32> to vector<2x128xf32>
    %60 = arith.addf %59, %56 : vector<2x128xf32>
    %61 = arith.mulf %60, %5 : vector<2x128xf32>
    %62 = math.tanh %61 : vector<2x128xf32>
    %63 = arith.mulf %62, %5 : vector<2x128xf32>
    %64 = arith.addf %63, %8 : vector<2x128xf32>
    %65 = vector.extract_strided_slice %64 {offsets = [0, 0], sizes = [2, 32], strides = [1, 1]} : vector<2x128xf32> to vector<2x32xf32>
    %66 = vector.extract_strided_slice %64 {offsets = [0, 32], sizes = [2, 32], strides = [1, 1]} : vector<2x128xf32> to vector<2x32xf32>
    %67 = vector.extract_strided_slice %64 {offsets = [0, 64], sizes = [2, 32], strides = [1, 1]} : vector<2x128xf32> to vector<2x32xf32>
    %68 = vector.extract_strided_slice %64 {offsets = [0, 96], sizes = [2, 32], strides = [1, 1]} : vector<2x128xf32> to vector<2x32xf32>
    %69 = arith.mulf %66, %46 : vector<2x32xf32>
    %70 = arith.mulf %65, %68 : vector<2x32xf32>
    %71 = arith.addf %69, %70 : vector<2x32xf32>
    %72 = math.tanh %71 : vector<2x32xf32>
    %73 = arith.mulf %67, %72 : vector<2x32xf32>
    %74 = arith.index_cast %c1_i32 : i32 to index
    %c0_31 = arith.constant 0 : index
    %c0_32 = arith.constant 0 : index
    %75 = vector.load %arg17[%74, %c0_31, %c0_32] : memref<8x2x32xf32, #tpu.memory_space<vmem>>, vector<1x2x32xf32>
    %76 = vector.shape_cast %75 : vector<1x2x32xf32> to vector<2x32xf32>
    %77 = vector.shape_cast %73 : vector<2x32xf32> to vector<1x2x32xf32>
    tpu.vector_store %arg17[%74, %c0_31, %c0_32], %77 {strides = array<i32>} : memref<8x2x32xf32, #tpu.memory_space<vmem>>, vector<1x2x32xf32>,
    %c2_i32 = arith.constant 2 : i32
    %78 = tpu.concatenate %73, %73, %73, %73 in 1 : vector<2x32xf32>, vector<2x32xf32>, vector<2x32xf32>, vector<2x32xf32> -> vector<2x128xf32>
    %79 = arith.mulf %78, %26 : vector<2x128xf32>
    %80 = arith.truncf %79 : vector<2x128xf32> to vector<2x128xbf16>
    %cst_33 = arith.constant dense<0.000000e+00> : vector<2x128xf32>
    %81 = tpu.matmul %80, %27, %cst_33 {dimension_numbers = #tpu.dot_dimension_numbers<[1], [0], [0], [1], [0, 0, 1, 1], [], []>} : vector<2x128xbf16>, vector<128x128xbf16>, vector<2x128xf32> -> vector<2x128xf32>
    %82 = arith.index_cast %c2_i32 : i32 to index
    %c0_34 = arith.constant 0 : index
    %c0_35 = arith.constant 0 : index
    %83 = vector.load %arg16[%82, %c0_34, %c0_35] : memref<8x2x128xf32, #tpu.memory_space<vmem>>, vector<1x2x128xf32>
    %84 = vector.shape_cast %83 : vector<1x2x128xf32> to vector<2x128xf32>
    %85 = arith.addf %84, %81 : vector<2x128xf32>
    %86 = arith.mulf %85, %5 : vector<2x128xf32>
    %87 = math.tanh %86 : vector<2x128xf32>
    %88 = arith.mulf %87, %5 : vector<2x128xf32>
    %89 = arith.addf %88, %8 : vector<2x128xf32>
    %90 = vector.extract_strided_slice %89 {offsets = [0, 0], sizes = [2, 32], strides = [1, 1]} : vector<2x128xf32> to vector<2x32xf32>
    %91 = vector.extract_strided_slice %89 {offsets = [0, 32], sizes = [2, 32], strides = [1, 1]} : vector<2x128xf32> to vector<2x32xf32>
    %92 = vector.extract_strided_slice %89 {offsets = [0, 64], sizes = [2, 32], strides = [1, 1]} : vector<2x128xf32> to vector<2x32xf32>
    %93 = vector.extract_strided_slice %89 {offsets = [0, 96], sizes = [2, 32], strides = [1, 1]} : vector<2x128xf32> to vector<2x32xf32>
    %94 = arith.mulf %91, %71 : vector<2x32xf32>
    %95 = arith.mulf %90, %93 : vector<2x32xf32>
    %96 = arith.addf %94, %95 : vector<2x32xf32>
    %97 = math.tanh %96 : vector<2x32xf32>
    %98 = arith.mulf %92, %97 : vector<2x32xf32>
    %99 = arith.index_cast %c2_i32 : i32 to index
    %c0_36 = arith.constant 0 : index
    %c0_37 = arith.constant 0 : index
    %100 = vector.load %arg17[%99, %c0_36, %c0_37] : memref<8x2x32xf32, #tpu.memory_space<vmem>>, vector<1x2x32xf32>
    %101 = vector.shape_cast %100 : vector<1x2x32xf32> to vector<2x32xf32>
    %102 = vector.shape_cast %98 : vector<2x32xf32> to vector<1x2x32xf32>
    tpu.vector_store %arg17[%99, %c0_36, %c0_37], %102 {strides = array<i32>} : memref<8x2x32xf32, #tpu.memory_space<vmem>>, vector<1x2x32xf32>,
    %c3_i32 = arith.constant 3 : i32
    %103 = tpu.concatenate %98, %98, %98, %98 in 1 : vector<2x32xf32>, vector<2x32xf32>, vector<2x32xf32>, vector<2x32xf32> -> vector<2x128xf32>
    %104 = arith.mulf %103, %26 : vector<2x128xf32>
    %105 = arith.truncf %104 : vector<2x128xf32> to vector<2x128xbf16>
    %cst_38 = arith.constant dense<0.000000e+00> : vector<2x128xf32>
    %106 = tpu.matmul %105, %27, %cst_38 {dimension_numbers = #tpu.dot_dimension_numbers<[1], [0], [0], [1], [0, 0, 1, 1], [], []>} : vector<2x128xbf16>, vector<128x128xbf16>, vector<2x128xf32> -> vector<2x128xf32>
    %107 = arith.index_cast %c3_i32 : i32 to index
    %c0_39 = arith.constant 0 : index
    %c0_40 = arith.constant 0 : index
    %108 = vector.load %arg16[%107, %c0_39, %c0_40] : memref<8x2x128xf32, #tpu.memory_space<vmem>>, vector<1x2x128xf32>
    %109 = vector.shape_cast %108 : vector<1x2x128xf32> to vector<2x128xf32>
    %110 = arith.addf %109, %106 : vector<2x128xf32>
    %111 = arith.mulf %110, %5 : vector<2x128xf32>
    %112 = math.tanh %111 : vector<2x128xf32>
    %113 = arith.mulf %112, %5 : vector<2x128xf32>
    %114 = arith.addf %113, %8 : vector<2x128xf32>
    %115 = vector.extract_strided_slice %114 {offsets = [0, 0], sizes = [2, 32], strides = [1, 1]} : vector<2x128xf32> to vector<2x32xf32>
    %116 = vector.extract_strided_slice %114 {offsets = [0, 32], sizes = [2, 32], strides = [1, 1]} : vector<2x128xf32> to vector<2x32xf32>
    %117 = vector.extract_strided_slice %114 {offsets = [0, 64], sizes = [2, 32], strides = [1, 1]} : vector<2x128xf32> to vector<2x32xf32>
    %118 = vector.extract_strided_slice %114 {offsets = [0, 96], sizes = [2, 32], strides = [1, 1]} : vector<2x128xf32> to vector<2x32xf32>
    %119 = arith.mulf %116, %96 : vector<2x32xf32>
    %120 = arith.mulf %115, %118 : vector<2x32xf32>
    %121 = arith.addf %119, %120 : vector<2x32xf32>
    %122 = math.tanh %121 : vector<2x32xf32>
    %123 = arith.mulf %117, %122 : vector<2x32xf32>
    %124 = arith.index_cast %c3_i32 : i32 to index
    %c0_41 = arith.constant 0 : index
    %c0_42 = arith.constant 0 : index
    %125 = vector.load %arg17[%124, %c0_41, %c0_42] : memref<8x2x32xf32, #tpu.memory_space<vmem>>, vector<1x2x32xf32>
    %126 = vector.shape_cast %125 : vector<1x2x32xf32> to vector<2x32xf32>
    %127 = vector.shape_cast %123 : vector<2x32xf32> to vector<1x2x32xf32>
    tpu.vector_store %arg17[%124, %c0_41, %c0_42], %127 {strides = array<i32>} : memref<8x2x32xf32, #tpu.memory_space<vmem>>, vector<1x2x32xf32>,
    %c4_i32 = arith.constant 4 : i32
    %128 = tpu.concatenate %123, %123, %123, %123 in 1 : vector<2x32xf32>, vector<2x32xf32>, vector<2x32xf32>, vector<2x32xf32> -> vector<2x128xf32>
    %129 = arith.mulf %128, %26 : vector<2x128xf32>
    %130 = arith.truncf %129 : vector<2x128xf32> to vector<2x128xbf16>
    %cst_43 = arith.constant dense<0.000000e+00> : vector<2x128xf32>
    %131 = tpu.matmul %130, %27, %cst_43 {dimension_numbers = #tpu.dot_dimension_numbers<[1], [0], [0], [1], [0, 0, 1, 1], [], []>} : vector<2x128xbf16>, vector<128x128xbf16>, vector<2x128xf32> -> vector<2x128xf32>
    %132 = arith.index_cast %c4_i32 : i32 to index
    %c0_44 = arith.constant 0 : index
    %c0_45 = arith.constant 0 : index
    %133 = vector.load %arg16[%132, %c0_44, %c0_45] : memref<8x2x128xf32, #tpu.memory_space<vmem>>, vector<1x2x128xf32>
    %134 = vector.shape_cast %133 : vector<1x2x128xf32> to vector<2x128xf32>
    %135 = arith.addf %134, %131 : vector<2x128xf32>
    %136 = arith.mulf %135, %5 : vector<2x128xf32>
    %137 = math.tanh %136 : vector<2x128xf32>
    %138 = arith.mulf %137, %5 : vector<2x128xf32>
    %139 = arith.addf %138, %8 : vector<2x128xf32>
    %140 = vector.extract_strided_slice %139 {offsets = [0, 0], sizes = [2, 32], strides = [1, 1]} : vector<2x128xf32> to vector<2x32xf32>
    %141 = vector.extract_strided_slice %139 {offsets = [0, 32], sizes = [2, 32], strides = [1, 1]} : vector<2x128xf32> to vector<2x32xf32>
    %142 = vector.extract_strided_slice %139 {offsets = [0, 64], sizes = [2, 32], strides = [1, 1]} : vector<2x128xf32> to vector<2x32xf32>
    %143 = vector.extract_strided_slice %139 {offsets = [0, 96], sizes = [2, 32], strides = [1, 1]} : vector<2x128xf32> to vector<2x32xf32>
    %144 = arith.mulf %141, %121 : vector<2x32xf32>
    %145 = arith.mulf %140, %143 : vector<2x32xf32>
    %146 = arith.addf %144, %145 : vector<2x32xf32>
    %147 = math.tanh %146 : vector<2x32xf32>
    %148 = arith.mulf %142, %147 : vector<2x32xf32>
    %149 = arith.index_cast %c4_i32 : i32 to index
    %c0_46 = arith.constant 0 : index
    %c0_47 = arith.constant 0 : index
    %150 = vector.load %arg17[%149, %c0_46, %c0_47] : memref<8x2x32xf32, #tpu.memory_space<vmem>>, vector<1x2x32xf32>
    %151 = vector.shape_cast %150 : vector<1x2x32xf32> to vector<2x32xf32>
    %152 = vector.shape_cast %148 : vector<2x32xf32> to vector<1x2x32xf32>
    tpu.vector_store %arg17[%149, %c0_46, %c0_47], %152 {strides = array<i32>} : memref<8x2x32xf32, #tpu.memory_space<vmem>>, vector<1x2x32xf32>,
    %c5_i32 = arith.constant 5 : i32
    %153 = tpu.concatenate %148, %148, %148, %148 in 1 : vector<2x32xf32>, vector<2x32xf32>, vector<2x32xf32>, vector<2x32xf32> -> vector<2x128xf32>
    %154 = arith.mulf %153, %26 : vector<2x128xf32>
    %155 = arith.truncf %154 : vector<2x128xf32> to vector<2x128xbf16>
    %cst_48 = arith.constant dense<0.000000e+00> : vector<2x128xf32>
    %156 = tpu.matmul %155, %27, %cst_48 {dimension_numbers = #tpu.dot_dimension_numbers<[1], [0], [0], [1], [0, 0, 1, 1], [], []>} : vector<2x128xbf16>, vector<128x128xbf16>, vector<2x128xf32> -> vector<2x128xf32>
    %157 = arith.index_cast %c5_i32 : i32 to index
    %c0_49 = arith.constant 0 : index
    %c0_50 = arith.constant 0 : index
    %158 = vector.load %arg16[%157, %c0_49, %c0_50] : memref<8x2x128xf32, #tpu.memory_space<vmem>>, vector<1x2x128xf32>
    %159 = vector.shape_cast %158 : vector<1x2x128xf32> to vector<2x128xf32>
    %160 = arith.addf %159, %156 : vector<2x128xf32>
    %161 = arith.mulf %160, %5 : vector<2x128xf32>
    %162 = math.tanh %161 : vector<2x128xf32>
    %163 = arith.mulf %162, %5 : vector<2x128xf32>
    %164 = arith.addf %163, %8 : vector<2x128xf32>
    %165 = vector.extract_strided_slice %164 {offsets = [0, 0], sizes = [2, 32], strides = [1, 1]} : vector<2x128xf32> to vector<2x32xf32>
    %166 = vector.extract_strided_slice %164 {offsets = [0, 32], sizes = [2, 32], strides = [1, 1]} : vector<2x128xf32> to vector<2x32xf32>
    %167 = vector.extract_strided_slice %164 {offsets = [0, 64], sizes = [2, 32], strides = [1, 1]} : vector<2x128xf32> to vector<2x32xf32>
    %168 = vector.extract_strided_slice %164 {offsets = [0, 96], sizes = [2, 32], strides = [1, 1]} : vector<2x128xf32> to vector<2x32xf32>
    %169 = arith.mulf %166, %146 : vector<2x32xf32>
    %170 = arith.mulf %165, %168 : vector<2x32xf32>
    %171 = arith.addf %169, %170 : vector<2x32xf32>
    %172 = math.tanh %171 : vector<2x32xf32>
    %173 = arith.mulf %167, %172 : vector<2x32xf32>
    %174 = arith.index_cast %c5_i32 : i32 to index
    %c0_51 = arith.constant 0 : index
    %c0_52 = arith.constant 0 : index
    %175 = vector.load %arg17[%174, %c0_51, %c0_52] : memref<8x2x32xf32, #tpu.memory_space<vmem>>, vector<1x2x32xf32>
    %176 = vector.shape_cast %175 : vector<1x2x32xf32> to vector<2x32xf32>
    %177 = vector.shape_cast %173 : vector<2x32xf32> to vector<1x2x32xf32>
    tpu.vector_store %arg17[%174, %c0_51, %c0_52], %177 {strides = array<i32>} : memref<8x2x32xf32, #tpu.memory_space<vmem>>, vector<1x2x32xf32>,
    %c6_i32 = arith.constant 6 : i32
    %178 = tpu.concatenate %173, %173, %173, %173 in 1 : vector<2x32xf32>, vector<2x32xf32>, vector<2x32xf32>, vector<2x32xf32> -> vector<2x128xf32>
    %179 = arith.mulf %178, %26 : vector<2x128xf32>
    %180 = arith.truncf %179 : vector<2x128xf32> to vector<2x128xbf16>
    %cst_53 = arith.constant dense<0.000000e+00> : vector<2x128xf32>
    %181 = tpu.matmul %180, %27, %cst_53 {dimension_numbers = #tpu.dot_dimension_numbers<[1], [0], [0], [1], [0, 0, 1, 1], [], []>} : vector<2x128xbf16>, vector<128x128xbf16>, vector<2x128xf32> -> vector<2x128xf32>
    %182 = arith.index_cast %c6_i32 : i32 to index
    %c0_54 = arith.constant 0 : index
    %c0_55 = arith.constant 0 : index
    %183 = vector.load %arg16[%182, %c0_54, %c0_55] : memref<8x2x128xf32, #tpu.memory_space<vmem>>, vector<1x2x128xf32>
    %184 = vector.shape_cast %183 : vector<1x2x128xf32> to vector<2x128xf32>
    %185 = arith.addf %184, %181 : vector<2x128xf32>
    %186 = arith.mulf %185, %5 : vector<2x128xf32>
    %187 = math.tanh %186 : vector<2x128xf32>
    %188 = arith.mulf %187, %5 : vector<2x128xf32>
    %189 = arith.addf %188, %8 : vector<2x128xf32>
    %190 = vector.extract_strided_slice %189 {offsets = [0, 0], sizes = [2, 32], strides = [1, 1]} : vector<2x128xf32> to vector<2x32xf32>
    %191 = vector.extract_strided_slice %189 {offsets = [0, 32], sizes = [2, 32], strides = [1, 1]} : vector<2x128xf32> to vector<2x32xf32>
    %192 = vector.extract_strided_slice %189 {offsets = [0, 64], sizes = [2, 32], strides = [1, 1]} : vector<2x128xf32> to vector<2x32xf32>
    %193 = vector.extract_strided_slice %189 {offsets = [0, 96], sizes = [2, 32], strides = [1, 1]} : vector<2x128xf32> to vector<2x32xf32>
    %194 = arith.mulf %191, %171 : vector<2x32xf32>
    %195 = arith.mulf %190, %193 : vector<2x32xf32>
    %196 = arith.addf %194, %195 : vector<2x32xf32>
    %197 = math.tanh %196 : vector<2x32xf32>
    %198 = arith.mulf %192, %197 : vector<2x32xf32>
    %199 = arith.index_cast %c6_i32 : i32 to index
    %c0_56 = arith.constant 0 : index
    %c0_57 = arith.constant 0 : index
    %200 = vector.load %arg17[%199, %c0_56, %c0_57] : memref<8x2x32xf32, #tpu.memory_space<vmem>>, vector<1x2x32xf32>
    %201 = vector.shape_cast %200 : vector<1x2x32xf32> to vector<2x32xf32>
    %202 = vector.shape_cast %198 : vector<2x32xf32> to vector<1x2x32xf32>
    tpu.vector_store %arg17[%199, %c0_56, %c0_57], %202 {strides = array<i32>} : memref<8x2x32xf32, #tpu.memory_space<vmem>>, vector<1x2x32xf32>,
    %c7_i32 = arith.constant 7 : i32
    %203 = tpu.concatenate %198, %198, %198, %198 in 1 : vector<2x32xf32>, vector<2x32xf32>, vector<2x32xf32>, vector<2x32xf32> -> vector<2x128xf32>
    %204 = arith.mulf %203, %26 : vector<2x128xf32>
    %205 = arith.truncf %204 : vector<2x128xf32> to vector<2x128xbf16>
    %cst_58 = arith.constant dense<0.000000e+00> : vector<2x128xf32>
    %206 = tpu.matmul %205, %27, %cst_58 {dimension_numbers = #tpu.dot_dimension_numbers<[1], [0], [0], [1], [0, 0, 1, 1], [], []>} : vector<2x128xbf16>, vector<128x128xbf16>, vector<2x128xf32> -> vector<2x128xf32>
    %207 = arith.index_cast %c7_i32 : i32 to index
    %c0_59 = arith.constant 0 : index
    %c0_60 = arith.constant 0 : index
    %208 = vector.load %arg16[%207, %c0_59, %c0_60] : memref<8x2x128xf32, #tpu.memory_space<vmem>>, vector<1x2x128xf32>
    %209 = vector.shape_cast %208 : vector<1x2x128xf32> to vector<2x128xf32>
    %210 = arith.addf %209, %206 : vector<2x128xf32>
    %211 = arith.mulf %210, %5 : vector<2x128xf32>
    %212 = math.tanh %211 : vector<2x128xf32>
    %213 = arith.mulf %212, %5 : vector<2x128xf32>
    %214 = arith.addf %213, %8 : vector<2x128xf32>
    %215 = vector.extract_strided_slice %214 {offsets = [0, 0], sizes = [2, 32], strides = [1, 1]} : vector<2x128xf32> to vector<2x32xf32>
    %216 = vector.extract_strided_slice %214 {offsets = [0, 32], sizes = [2, 32], strides = [1, 1]} : vector<2x128xf32> to vector<2x32xf32>
    %217 = vector.extract_strided_slice %214 {offsets = [0, 64], sizes = [2, 32], strides = [1, 1]} : vector<2x128xf32> to vector<2x32xf32>
    %218 = vector.extract_strided_slice %214 {offsets = [0, 96], sizes = [2, 32], strides = [1, 1]} : vector<2x128xf32> to vector<2x32xf32>
    %219 = arith.mulf %216, %196 : vector<2x32xf32>
    %220 = arith.mulf %215, %218 : vector<2x32xf32>
    %221 = arith.addf %219, %220 : vector<2x32xf32>
    %222 = math.tanh %221 : vector<2x32xf32>
    %223 = arith.mulf %217, %222 : vector<2x32xf32>
    %224 = arith.index_cast %c7_i32 : i32 to index
    %c0_61 = arith.constant 0 : index
    %c0_62 = arith.constant 0 : index
    %225 = vector.load %arg17[%224, %c0_61, %c0_62] : memref<8x2x32xf32, #tpu.memory_space<vmem>>, vector<1x2x32xf32>
    %226 = vector.shape_cast %225 : vector<1x2x32xf32> to vector<2x32xf32>
    %227 = vector.shape_cast %223 : vector<2x32xf32> to vector<1x2x32xf32>
    tpu.vector_store %arg17[%224, %c0_61, %c0_62], %227 {strides = array<i32>} : memref<8x2x32xf32, #tpu.memory_space<vmem>>, vector<1x2x32xf32>,
    %c8_i32 = arith.constant 8 : i32
    %c0_63 = arith.constant 0 : index
    %c0_64 = arith.constant 0 : index
    %c0_65 = arith.constant 0 : index
    %228 = vector.load %arg14[%c0_63, %c0_64, %c0_65] : memref<2x2x32xf32, #tpu.memory_space<vmem>>, vector<1x2x32xf32>
    %229 = vector.shape_cast %228 : vector<1x2x32xf32> to vector<2x32xf32>
    %230 = vector.shape_cast %223 : vector<2x32xf32> to vector<1x2x32xf32>
    tpu.vector_store %arg14[%c0_63, %c0_64, %c0_65], %230 {strides = array<i32>} : memref<2x2x32xf32, #tpu.memory_space<vmem>>, vector<1x2x32xf32>,
    %c0_66 = arith.constant 0 : index
    %c0_67 = arith.constant 0 : index
    %c0_68 = arith.constant 0 : index
    %231 = vector.load %arg15[%c0_66, %c0_67, %c0_68] : memref<2x2x32xf32, #tpu.memory_space<vmem>>, vector<1x2x32xf32>
    %232 = vector.shape_cast %231 : vector<1x2x32xf32> to vector<2x32xf32>
    %233 = vector.shape_cast %221 : vector<2x32xf32> to vector<1x2x32xf32>
    tpu.vector_store %arg15[%c0_66, %c0_67, %c0_68], %233 {strides = array<i32>} : memref<2x2x32xf32, #tpu.memory_space<vmem>>, vector<1x2x32xf32>,
    %c0_69 = arith.constant 0 : index
    %c0_70 = arith.constant 0 : index
    %c0_71 = arith.constant 0 : index
    %234 = vector.load %arg17[%c0_69, %c0_70, %c0_71] : memref<8x2x32xf32, #tpu.memory_space<vmem>>, vector<8x2x32xf32>
    %235 = tpu.concatenate %234, %234, %234, %234 in 2 : vector<8x2x32xf32>, vector<8x2x32xf32>, vector<8x2x32xf32>, vector<8x2x32xf32> -> vector<8x2x128xf32>
    %c0_72 = arith.constant 0 : index
    %c0_73 = arith.constant 0 : index
    %236 = vector.load %arg6[%c0_72, %c0_73] : memref<2x128xf32, #tpu.memory_space<vmem>>, vector<2x128xf32>
    %237 = vector.shape_cast %236 : vector<2x128xf32> to vector<1x2x128xf32>
    %238 = vector.broadcast %237 : vector<1x2x128xf32> to vector<8x2x128xf32>
    %239 = arith.mulf %235, %238 : vector<8x2x128xf32>
    %240 = vector.shape_cast %239 : vector<8x2x128xf32> to vector<16x128xf32>
    %241 = arith.truncf %240 : vector<16x128xf32> to vector<16x128xbf16>
    %c0_74 = arith.constant 0 : index
    %c0_75 = arith.constant 0 : index
    %242 = vector.load %arg7[%c0_74, %c0_75] : memref<128x128xbf16, #tpu.memory_space<vmem>>, vector<128x128xbf16>
    %cst_76 = arith.constant dense<0.000000e+00> : vector<16x128xf32>
    %243 = tpu.matmul %241, %242, %cst_76 {dimension_numbers = #tpu.dot_dimension_numbers<[1], [0], [0], [1], [0, 0, 1, 1], [], []>} : vector<16x128xbf16>, vector<128x128xbf16>, vector<16x128xf32> -> vector<16x128xf32>
    %c0_77 = arith.constant 0 : index
    %c0_78 = arith.constant 0 : index
    %244 = vector.load %arg8[%c0_77, %c0_78] : memref<1x128xf32, #tpu.memory_space<vmem>>, vector<1x128xf32>
    %245 = vector.broadcast %244 : vector<1x128xf32> to vector<16x128xf32>
    %246 = arith.addf %243, %245 : vector<16x128xf32>
    %247 = vector.shape_cast %246 : vector<16x128xf32> to vector<8x2x128xf32>
    %c0_79 = arith.constant 0 : index
    %c0_80 = arith.constant 0 : index
    %c0_81 = arith.constant 0 : index
    %248 = vector.load %arg16[%c0_79, %c0_80, %c0_81] : memref<8x2x128xf32, #tpu.memory_space<vmem>>, vector<8x2x128xf32>
    tpu.vector_store %arg16[%c0_79, %c0_80, %c0_81], %247 {strides = array<i32>} : memref<8x2x128xf32, #tpu.memory_space<vmem>>, vector<8x2x128xf32>,
    %c0_82 = arith.constant 0 : index
    %c0_83 = arith.constant 0 : index
    %249 = vector.load %arg9[%c0_82, %c0_83] : memref<2x128xf32, #tpu.memory_space<vmem>>, vector<2x128xf32>
    %c0_84 = arith.constant 0 : index
    %c0_85 = arith.constant 0 : index
    %250 = vector.load %arg10[%c0_84, %c0_85] : memref<128x128xbf16, #tpu.memory_space<vmem>>, vector<128x128xbf16>
    %c0_i32_86 = arith.constant 0 : i32
    %251 = tpu.concatenate %223, %223, %223, %223 in 1 : vector<2x32xf32>, vector<2x32xf32>, vector<2x32xf32>, vector<2x32xf32> -> vector<2x128xf32>
    %252 = arith.mulf %251, %249 : vector<2x128xf32>
    %253 = arith.truncf %252 : vector<2x128xf32> to vector<2x128xbf16>
    %cst_87 = arith.constant dense<0.000000e+00> : vector<2x128xf32>
    %254 = tpu.matmul %253, %250, %cst_87 {dimension_numbers = #tpu.dot_dimension_numbers<[1], [0], [0], [1], [0, 0, 1, 1], [], []>} : vector<2x128xbf16>, vector<128x128xbf16>, vector<2x128xf32> -> vector<2x128xf32>
    %255 = arith.index_cast %c0_i32_86 : i32 to index
    %c0_88 = arith.constant 0 : index
    %c0_89 = arith.constant 0 : index
    %256 = vector.load %arg16[%255, %c0_88, %c0_89] : memref<8x2x128xf32, #tpu.memory_space<vmem>>, vector<1x2x128xf32>
    %257 = vector.shape_cast %256 : vector<1x2x128xf32> to vector<2x128xf32>
    %258 = arith.addf %257, %254 : vector<2x128xf32>
    %259 = arith.mulf %258, %5 : vector<2x128xf32>
    %260 = math.tanh %259 : vector<2x128xf32>
    %261 = arith.mulf %260, %5 : vector<2x128xf32>
    %262 = arith.addf %261, %8 : vector<2x128xf32>
    %263 = vector.extract_strided_slice %262 {offsets = [0, 0], sizes = [2, 32], strides = [1, 1]} : vector<2x128xf32> to vector<2x32xf32>
    %264 = vector.extract_strided_slice %262 {offsets = [0, 32], sizes = [2, 32], strides = [1, 1]} : vector<2x128xf32> to vector<2x32xf32>
    %265 = vector.extract_strided_slice %262 {offsets = [0, 64], sizes = [2, 32], strides = [1, 1]} : vector<2x128xf32> to vector<2x32xf32>
    %266 = vector.extract_strided_slice %262 {offsets = [0, 96], sizes = [2, 32], strides = [1, 1]} : vector<2x128xf32> to vector<2x32xf32>
    %267 = arith.mulf %264, %221 : vector<2x32xf32>
    %268 = arith.mulf %263, %266 : vector<2x32xf32>
    %269 = arith.addf %267, %268 : vector<2x32xf32>
    %270 = math.tanh %269 : vector<2x32xf32>
    %271 = arith.mulf %265, %270 : vector<2x32xf32>
    %272 = arith.index_cast %c0_i32_86 : i32 to index
    %c0_90 = arith.constant 0 : index
    %c0_91 = arith.constant 0 : index
    %273 = vector.load %arg13[%272, %c0_90, %c0_91] : memref<8x2x32xf32, #tpu.memory_space<vmem>>, vector<1x2x32xf32>
    %274 = vector.shape_cast %273 : vector<1x2x32xf32> to vector<2x32xf32>
    %275 = vector.shape_cast %271 : vector<2x32xf32> to vector<1x2x32xf32>
    tpu.vector_store %arg13[%272, %c0_90, %c0_91], %275 {strides = array<i32>} : memref<8x2x32xf32, #tpu.memory_space<vmem>>, vector<1x2x32xf32>,
    %c1_i32_92 = arith.constant 1 : i32
    %276 = tpu.concatenate %271, %271, %271, %271 in 1 : vector<2x32xf32>, vector<2x32xf32>, vector<2x32xf32>, vector<2x32xf32> -> vector<2x128xf32>
    %277 = arith.mulf %276, %249 : vector<2x128xf32>
    %278 = arith.truncf %277 : vector<2x128xf32> to vector<2x128xbf16>
    %cst_93 = arith.constant dense<0.000000e+00> : vector<2x128xf32>
    %279 = tpu.matmul %278, %250, %cst_93 {dimension_numbers = #tpu.dot_dimension_numbers<[1], [0], [0], [1], [0, 0, 1, 1], [], []>} : vector<2x128xbf16>, vector<128x128xbf16>, vector<2x128xf32> -> vector<2x128xf32>
    %280 = arith.index_cast %c1_i32_92 : i32 to index
    %c0_94 = arith.constant 0 : index
    %c0_95 = arith.constant 0 : index
    %281 = vector.load %arg16[%280, %c0_94, %c0_95] : memref<8x2x128xf32, #tpu.memory_space<vmem>>, vector<1x2x128xf32>
    %282 = vector.shape_cast %281 : vector<1x2x128xf32> to vector<2x128xf32>
    %283 = arith.addf %282, %279 : vector<2x128xf32>
    %284 = arith.mulf %283, %5 : vector<2x128xf32>
    %285 = math.tanh %284 : vector<2x128xf32>
    %286 = arith.mulf %285, %5 : vector<2x128xf32>
    %287 = arith.addf %286, %8 : vector<2x128xf32>
    %288 = vector.extract_strided_slice %287 {offsets = [0, 0], sizes = [2, 32], strides = [1, 1]} : vector<2x128xf32> to vector<2x32xf32>
    %289 = vector.extract_strided_slice %287 {offsets = [0, 32], sizes = [2, 32], strides = [1, 1]} : vector<2x128xf32> to vector<2x32xf32>
    %290 = vector.extract_strided_slice %287 {offsets = [0, 64], sizes = [2, 32], strides = [1, 1]} : vector<2x128xf32> to vector<2x32xf32>
    %291 = vector.extract_strided_slice %287 {offsets = [0, 96], sizes = [2, 32], strides = [1, 1]} : vector<2x128xf32> to vector<2x32xf32>
    %292 = arith.mulf %289, %269 : vector<2x32xf32>
    %293 = arith.mulf %288, %291 : vector<2x32xf32>
    %294 = arith.addf %292, %293 : vector<2x32xf32>
    %295 = math.tanh %294 : vector<2x32xf32>
    %296 = arith.mulf %290, %295 : vector<2x32xf32>
    %297 = arith.index_cast %c1_i32_92 : i32 to index
    %c0_96 = arith.constant 0 : index
    %c0_97 = arith.constant 0 : index
    %298 = vector.load %arg13[%297, %c0_96, %c0_97] : memref<8x2x32xf32, #tpu.memory_space<vmem>>, vector<1x2x32xf32>
    %299 = vector.shape_cast %298 : vector<1x2x32xf32> to vector<2x32xf32>
    %300 = vector.shape_cast %296 : vector<2x32xf32> to vector<1x2x32xf32>
    tpu.vector_store %arg13[%297, %c0_96, %c0_97], %300 {strides = array<i32>} : memref<8x2x32xf32, #tpu.memory_space<vmem>>, vector<1x2x32xf32>,
    %c2_i32_98 = arith.constant 2 : i32
    %301 = tpu.concatenate %296, %296, %296, %296 in 1 : vector<2x32xf32>, vector<2x32xf32>, vector<2x32xf32>, vector<2x32xf32> -> vector<2x128xf32>
    %302 = arith.mulf %301, %249 : vector<2x128xf32>
    %303 = arith.truncf %302 : vector<2x128xf32> to vector<2x128xbf16>
    %cst_99 = arith.constant dense<0.000000e+00> : vector<2x128xf32>
    %304 = tpu.matmul %303, %250, %cst_99 {dimension_numbers = #tpu.dot_dimension_numbers<[1], [0], [0], [1], [0, 0, 1, 1], [], []>} : vector<2x128xbf16>, vector<128x128xbf16>, vector<2x128xf32> -> vector<2x128xf32>
    %305 = arith.index_cast %c2_i32_98 : i32 to index
    %c0_100 = arith.constant 0 : index
    %c0_101 = arith.constant 0 : index
    %306 = vector.load %arg16[%305, %c0_100, %c0_101] : memref<8x2x128xf32, #tpu.memory_space<vmem>>, vector<1x2x128xf32>
    %307 = vector.shape_cast %306 : vector<1x2x128xf32> to vector<2x128xf32>
    %308 = arith.addf %307, %304 : vector<2x128xf32>
    %309 = arith.mulf %308, %5 : vector<2x128xf32>
    %310 = math.tanh %309 : vector<2x128xf32>
    %311 = arith.mulf %310, %5 : vector<2x128xf32>
    %312 = arith.addf %311, %8 : vector<2x128xf32>
    %313 = vector.extract_strided_slice %312 {offsets = [0, 0], sizes = [2, 32], strides = [1, 1]} : vector<2x128xf32> to vector<2x32xf32>
    %314 = vector.extract_strided_slice %312 {offsets = [0, 32], sizes = [2, 32], strides = [1, 1]} : vector<2x128xf32> to vector<2x32xf32>
    %315 = vector.extract_strided_slice %312 {offsets = [0, 64], sizes = [2, 32], strides = [1, 1]} : vector<2x128xf32> to vector<2x32xf32>
    %316 = vector.extract_strided_slice %312 {offsets = [0, 96], sizes = [2, 32], strides = [1, 1]} : vector<2x128xf32> to vector<2x32xf32>
    %317 = arith.mulf %314, %294 : vector<2x32xf32>
    %318 = arith.mulf %313, %316 : vector<2x32xf32>
    %319 = arith.addf %317, %318 : vector<2x32xf32>
    %320 = math.tanh %319 : vector<2x32xf32>
    %321 = arith.mulf %315, %320 : vector<2x32xf32>
    %322 = arith.index_cast %c2_i32_98 : i32 to index
    %c0_102 = arith.constant 0 : index
    %c0_103 = arith.constant 0 : index
    %323 = vector.load %arg13[%322, %c0_102, %c0_103] : memref<8x2x32xf32, #tpu.memory_space<vmem>>, vector<1x2x32xf32>
    %324 = vector.shape_cast %323 : vector<1x2x32xf32> to vector<2x32xf32>
    %325 = vector.shape_cast %321 : vector<2x32xf32> to vector<1x2x32xf32>
    tpu.vector_store %arg13[%322, %c0_102, %c0_103], %325 {strides = array<i32>} : memref<8x2x32xf32, #tpu.memory_space<vmem>>, vector<1x2x32xf32>,
    %c3_i32_104 = arith.constant 3 : i32
    %326 = tpu.concatenate %321, %321, %321, %321 in 1 : vector<2x32xf32>, vector<2x32xf32>, vector<2x32xf32>, vector<2x32xf32> -> vector<2x128xf32>
    %327 = arith.mulf %326, %249 : vector<2x128xf32>
    %328 = arith.truncf %327 : vector<2x128xf32> to vector<2x128xbf16>
    %cst_105 = arith.constant dense<0.000000e+00> : vector<2x128xf32>
    %329 = tpu.matmul %328, %250, %cst_105 {dimension_numbers = #tpu.dot_dimension_numbers<[1], [0], [0], [1], [0, 0, 1, 1], [], []>} : vector<2x128xbf16>, vector<128x128xbf16>, vector<2x128xf32> -> vector<2x128xf32>
    %330 = arith.index_cast %c3_i32_104 : i32 to index
    %c0_106 = arith.constant 0 : index
    %c0_107 = arith.constant 0 : index
    %331 = vector.load %arg16[%330, %c0_106, %c0_107] : memref<8x2x128xf32, #tpu.memory_space<vmem>>, vector<1x2x128xf32>
    %332 = vector.shape_cast %331 : vector<1x2x128xf32> to vector<2x128xf32>
    %333 = arith.addf %332, %329 : vector<2x128xf32>
    %334 = arith.mulf %333, %5 : vector<2x128xf32>
    %335 = math.tanh %334 : vector<2x128xf32>
    %336 = arith.mulf %335, %5 : vector<2x128xf32>
    %337 = arith.addf %336, %8 : vector<2x128xf32>
    %338 = vector.extract_strided_slice %337 {offsets = [0, 0], sizes = [2, 32], strides = [1, 1]} : vector<2x128xf32> to vector<2x32xf32>
    %339 = vector.extract_strided_slice %337 {offsets = [0, 32], sizes = [2, 32], strides = [1, 1]} : vector<2x128xf32> to vector<2x32xf32>
    %340 = vector.extract_strided_slice %337 {offsets = [0, 64], sizes = [2, 32], strides = [1, 1]} : vector<2x128xf32> to vector<2x32xf32>
    %341 = vector.extract_strided_slice %337 {offsets = [0, 96], sizes = [2, 32], strides = [1, 1]} : vector<2x128xf32> to vector<2x32xf32>
    %342 = arith.mulf %339, %319 : vector<2x32xf32>
    %343 = arith.mulf %338, %341 : vector<2x32xf32>
    %344 = arith.addf %342, %343 : vector<2x32xf32>
    %345 = math.tanh %344 : vector<2x32xf32>
    %346 = arith.mulf %340, %345 : vector<2x32xf32>
    %347 = arith.index_cast %c3_i32_104 : i32 to index
    %c0_108 = arith.constant 0 : index
    %c0_109 = arith.constant 0 : index
    %348 = vector.load %arg13[%347, %c0_108, %c0_109] : memref<8x2x32xf32, #tpu.memory_space<vmem>>, vector<1x2x32xf32>
    %349 = vector.shape_cast %348 : vector<1x2x32xf32> to vector<2x32xf32>
    %350 = vector.shape_cast %346 : vector<2x32xf32> to vector<1x2x32xf32>
    tpu.vector_store %arg13[%347, %c0_108, %c0_109], %350 {strides = array<i32>} : memref<8x2x32xf32, #tpu.memory_space<vmem>>, vector<1x2x32xf32>,
    %c4_i32_110 = arith.constant 4 : i32
    %351 = tpu.concatenate %346, %346, %346, %346 in 1 : vector<2x32xf32>, vector<2x32xf32>, vector<2x32xf32>, vector<2x32xf32> -> vector<2x128xf32>
    %352 = arith.mulf %351, %249 : vector<2x128xf32>
    %353 = arith.truncf %352 : vector<2x128xf32> to vector<2x128xbf16>
    %cst_111 = arith.constant dense<0.000000e+00> : vector<2x128xf32>
    %354 = tpu.matmul %353, %250, %cst_111 {dimension_numbers = #tpu.dot_dimension_numbers<[1], [0], [0], [1], [0, 0, 1, 1], [], []>} : vector<2x128xbf16>, vector<128x128xbf16>, vector<2x128xf32> -> vector<2x128xf32>
    %355 = arith.index_cast %c4_i32_110 : i32 to index
    %c0_112 = arith.constant 0 : index
    %c0_113 = arith.constant 0 : index
    %356 = vector.load %arg16[%355, %c0_112, %c0_113] : memref<8x2x128xf32, #tpu.memory_space<vmem>>, vector<1x2x128xf32>
    %357 = vector.shape_cast %356 : vector<1x2x128xf32> to vector<2x128xf32>
    %358 = arith.addf %357, %354 : vector<2x128xf32>
    %359 = arith.mulf %358, %5 : vector<2x128xf32>
    %360 = math.tanh %359 : vector<2x128xf32>
    %361 = arith.mulf %360, %5 : vector<2x128xf32>
    %362 = arith.addf %361, %8 : vector<2x128xf32>
    %363 = vector.extract_strided_slice %362 {offsets = [0, 0], sizes = [2, 32], strides = [1, 1]} : vector<2x128xf32> to vector<2x32xf32>
    %364 = vector.extract_strided_slice %362 {offsets = [0, 32], sizes = [2, 32], strides = [1, 1]} : vector<2x128xf32> to vector<2x32xf32>
    %365 = vector.extract_strided_slice %362 {offsets = [0, 64], sizes = [2, 32], strides = [1, 1]} : vector<2x128xf32> to vector<2x32xf32>
    %366 = vector.extract_strided_slice %362 {offsets = [0, 96], sizes = [2, 32], strides = [1, 1]} : vector<2x128xf32> to vector<2x32xf32>
    %367 = arith.mulf %364, %344 : vector<2x32xf32>
    %368 = arith.mulf %363, %366 : vector<2x32xf32>
    %369 = arith.addf %367, %368 : vector<2x32xf32>
    %370 = math.tanh %369 : vector<2x32xf32>
    %371 = arith.mulf %365, %370 : vector<2x32xf32>
    %372 = arith.index_cast %c4_i32_110 : i32 to index
    %c0_114 = arith.constant 0 : index
    %c0_115 = arith.constant 0 : index
    %373 = vector.load %arg13[%372, %c0_114, %c0_115] : memref<8x2x32xf32, #tpu.memory_space<vmem>>, vector<1x2x32xf32>
    %374 = vector.shape_cast %373 : vector<1x2x32xf32> to vector<2x32xf32>
    %375 = vector.shape_cast %371 : vector<2x32xf32> to vector<1x2x32xf32>
    tpu.vector_store %arg13[%372, %c0_114, %c0_115], %375 {strides = array<i32>} : memref<8x2x32xf32, #tpu.memory_space<vmem>>, vector<1x2x32xf32>,
    %c5_i32_116 = arith.constant 5 : i32
    %376 = tpu.concatenate %371, %371, %371, %371 in 1 : vector<2x32xf32>, vector<2x32xf32>, vector<2x32xf32>, vector<2x32xf32> -> vector<2x128xf32>
    %377 = arith.mulf %376, %249 : vector<2x128xf32>
    %378 = arith.truncf %377 : vector<2x128xf32> to vector<2x128xbf16>
    %cst_117 = arith.constant dense<0.000000e+00> : vector<2x128xf32>
    %379 = tpu.matmul %378, %250, %cst_117 {dimension_numbers = #tpu.dot_dimension_numbers<[1], [0], [0], [1], [0, 0, 1, 1], [], []>} : vector<2x128xbf16>, vector<128x128xbf16>, vector<2x128xf32> -> vector<2x128xf32>
    %380 = arith.index_cast %c5_i32_116 : i32 to index
    %c0_118 = arith.constant 0 : index
    %c0_119 = arith.constant 0 : index
    %381 = vector.load %arg16[%380, %c0_118, %c0_119] : memref<8x2x128xf32, #tpu.memory_space<vmem>>, vector<1x2x128xf32>
    %382 = vector.shape_cast %381 : vector<1x2x128xf32> to vector<2x128xf32>
    %383 = arith.addf %382, %379 : vector<2x128xf32>
    %384 = arith.mulf %383, %5 : vector<2x128xf32>
    %385 = math.tanh %384 : vector<2x128xf32>
    %386 = arith.mulf %385, %5 : vector<2x128xf32>
    %387 = arith.addf %386, %8 : vector<2x128xf32>
    %388 = vector.extract_strided_slice %387 {offsets = [0, 0], sizes = [2, 32], strides = [1, 1]} : vector<2x128xf32> to vector<2x32xf32>
    %389 = vector.extract_strided_slice %387 {offsets = [0, 32], sizes = [2, 32], strides = [1, 1]} : vector<2x128xf32> to vector<2x32xf32>
    %390 = vector.extract_strided_slice %387 {offsets = [0, 64], sizes = [2, 32], strides = [1, 1]} : vector<2x128xf32> to vector<2x32xf32>
    %391 = vector.extract_strided_slice %387 {offsets = [0, 96], sizes = [2, 32], strides = [1, 1]} : vector<2x128xf32> to vector<2x32xf32>
    %392 = arith.mulf %389, %369 : vector<2x32xf32>
    %393 = arith.mulf %388, %391 : vector<2x32xf32>
    %394 = arith.addf %392, %393 : vector<2x32xf32>
    %395 = math.tanh %394 : vector<2x32xf32>
    %396 = arith.mulf %390, %395 : vector<2x32xf32>
    %397 = arith.index_cast %c5_i32_116 : i32 to index
    %c0_120 = arith.constant 0 : index
    %c0_121 = arith.constant 0 : index
    %398 = vector.load %arg13[%397, %c0_120, %c0_121] : memref<8x2x32xf32, #tpu.memory_space<vmem>>, vector<1x2x32xf32>
    %399 = vector.shape_cast %398 : vector<1x2x32xf32> to vector<2x32xf32>
    %400 = vector.shape_cast %396 : vector<2x32xf32> to vector<1x2x32xf32>
    tpu.vector_store %arg13[%397, %c0_120, %c0_121], %400 {strides = array<i32>} : memref<8x2x32xf32, #tpu.memory_space<vmem>>, vector<1x2x32xf32>,
    %c6_i32_122 = arith.constant 6 : i32
    %401 = tpu.concatenate %396, %396, %396, %396 in 1 : vector<2x32xf32>, vector<2x32xf32>, vector<2x32xf32>, vector<2x32xf32> -> vector<2x128xf32>
    %402 = arith.mulf %401, %249 : vector<2x128xf32>
    %403 = arith.truncf %402 : vector<2x128xf32> to vector<2x128xbf16>
    %cst_123 = arith.constant dense<0.000000e+00> : vector<2x128xf32>
    %404 = tpu.matmul %403, %250, %cst_123 {dimension_numbers = #tpu.dot_dimension_numbers<[1], [0], [0], [1], [0, 0, 1, 1], [], []>} : vector<2x128xbf16>, vector<128x128xbf16>, vector<2x128xf32> -> vector<2x128xf32>
    %405 = arith.index_cast %c6_i32_122 : i32 to index
    %c0_124 = arith.constant 0 : index
    %c0_125 = arith.constant 0 : index
    %406 = vector.load %arg16[%405, %c0_124, %c0_125] : memref<8x2x128xf32, #tpu.memory_space<vmem>>, vector<1x2x128xf32>
    %407 = vector.shape_cast %406 : vector<1x2x128xf32> to vector<2x128xf32>
    %408 = arith.addf %407, %404 : vector<2x128xf32>
    %409 = arith.mulf %408, %5 : vector<2x128xf32>
    %410 = math.tanh %409 : vector<2x128xf32>
    %411 = arith.mulf %410, %5 : vector<2x128xf32>
    %412 = arith.addf %411, %8 : vector<2x128xf32>
    %413 = vector.extract_strided_slice %412 {offsets = [0, 0], sizes = [2, 32], strides = [1, 1]} : vector<2x128xf32> to vector<2x32xf32>
    %414 = vector.extract_strided_slice %412 {offsets = [0, 32], sizes = [2, 32], strides = [1, 1]} : vector<2x128xf32> to vector<2x32xf32>
    %415 = vector.extract_strided_slice %412 {offsets = [0, 64], sizes = [2, 32], strides = [1, 1]} : vector<2x128xf32> to vector<2x32xf32>
    %416 = vector.extract_strided_slice %412 {offsets = [0, 96], sizes = [2, 32], strides = [1, 1]} : vector<2x128xf32> to vector<2x32xf32>
    %417 = arith.mulf %414, %394 : vector<2x32xf32>
    %418 = arith.mulf %413, %416 : vector<2x32xf32>
    %419 = arith.addf %417, %418 : vector<2x32xf32>
    %420 = math.tanh %419 : vector<2x32xf32>
    %421 = arith.mulf %415, %420 : vector<2x32xf32>
    %422 = arith.index_cast %c6_i32_122 : i32 to index
    %c0_126 = arith.constant 0 : index
    %c0_127 = arith.constant 0 : index
    %423 = vector.load %arg13[%422, %c0_126, %c0_127] : memref<8x2x32xf32, #tpu.memory_space<vmem>>, vector<1x2x32xf32>
    %424 = vector.shape_cast %423 : vector<1x2x32xf32> to vector<2x32xf32>
    %425 = vector.shape_cast %421 : vector<2x32xf32> to vector<1x2x32xf32>
    tpu.vector_store %arg13[%422, %c0_126, %c0_127], %425 {strides = array<i32>} : memref<8x2x32xf32, #tpu.memory_space<vmem>>, vector<1x2x32xf32>,
    %c7_i32_128 = arith.constant 7 : i32
    %426 = tpu.concatenate %421, %421, %421, %421 in 1 : vector<2x32xf32>, vector<2x32xf32>, vector<2x32xf32>, vector<2x32xf32> -> vector<2x128xf32>
    %427 = arith.mulf %426, %249 : vector<2x128xf32>
    %428 = arith.truncf %427 : vector<2x128xf32> to vector<2x128xbf16>
    %cst_129 = arith.constant dense<0.000000e+00> : vector<2x128xf32>
    %429 = tpu.matmul %428, %250, %cst_129 {dimension_numbers = #tpu.dot_dimension_numbers<[1], [0], [0], [1], [0, 0, 1, 1], [], []>} : vector<2x128xbf16>, vector<128x128xbf16>, vector<2x128xf32> -> vector<2x128xf32>
    %430 = arith.index_cast %c7_i32_128 : i32 to index
    %c0_130 = arith.constant 0 : index
    %c0_131 = arith.constant 0 : index
    %431 = vector.load %arg16[%430, %c0_130, %c0_131] : memref<8x2x128xf32, #tpu.memory_space<vmem>>, vector<1x2x128xf32>
    %432 = vector.shape_cast %431 : vector<1x2x128xf32> to vector<2x128xf32>
    %433 = arith.addf %432, %429 : vector<2x128xf32>
    %434 = arith.mulf %433, %5 : vector<2x128xf32>
    %435 = math.tanh %434 : vector<2x128xf32>
    %436 = arith.mulf %435, %5 : vector<2x128xf32>
    %437 = arith.addf %436, %8 : vector<2x128xf32>
    %438 = vector.extract_strided_slice %437 {offsets = [0, 0], sizes = [2, 32], strides = [1, 1]} : vector<2x128xf32> to vector<2x32xf32>
    %439 = vector.extract_strided_slice %437 {offsets = [0, 32], sizes = [2, 32], strides = [1, 1]} : vector<2x128xf32> to vector<2x32xf32>
    %440 = vector.extract_strided_slice %437 {offsets = [0, 64], sizes = [2, 32], strides = [1, 1]} : vector<2x128xf32> to vector<2x32xf32>
    %441 = vector.extract_strided_slice %437 {offsets = [0, 96], sizes = [2, 32], strides = [1, 1]} : vector<2x128xf32> to vector<2x32xf32>
    %442 = arith.mulf %439, %419 : vector<2x32xf32>
    %443 = arith.mulf %438, %441 : vector<2x32xf32>
    %444 = arith.addf %442, %443 : vector<2x32xf32>
    %445 = math.tanh %444 : vector<2x32xf32>
    %446 = arith.mulf %440, %445 : vector<2x32xf32>
    %447 = arith.index_cast %c7_i32_128 : i32 to index
    %c0_132 = arith.constant 0 : index
    %c0_133 = arith.constant 0 : index
    %448 = vector.load %arg13[%447, %c0_132, %c0_133] : memref<8x2x32xf32, #tpu.memory_space<vmem>>, vector<1x2x32xf32>
    %449 = vector.shape_cast %448 : vector<1x2x32xf32> to vector<2x32xf32>
    %450 = vector.shape_cast %446 : vector<2x32xf32> to vector<1x2x32xf32>
    tpu.vector_store %arg13[%447, %c0_132, %c0_133], %450 {strides = array<i32>} : memref<8x2x32xf32, #tpu.memory_space<vmem>>, vector<1x2x32xf32>,
    %c8_i32_134 = arith.constant 8 : i32
    %c1 = arith.constant 1 : index
    %c0_135 = arith.constant 0 : index
    %c0_136 = arith.constant 0 : index
    %451 = vector.load %arg14[%c1, %c0_135, %c0_136] : memref<2x2x32xf32, #tpu.memory_space<vmem>>, vector<1x2x32xf32>
    %452 = vector.shape_cast %451 : vector<1x2x32xf32> to vector<2x32xf32>
    %453 = vector.shape_cast %446 : vector<2x32xf32> to vector<1x2x32xf32>
    tpu.vector_store %arg14[%c1, %c0_135, %c0_136], %453 {strides = array<i32>} : memref<2x2x32xf32, #tpu.memory_space<vmem>>, vector<1x2x32xf32>,
    %c1_137 = arith.constant 1 : index
    %c0_138 = arith.constant 0 : index
    %c0_139 = arith.constant 0 : index
    %454 = vector.load %arg15[%c1_137, %c0_138, %c0_139] : memref<2x2x32xf32, #tpu.memory_space<vmem>>, vector<1x2x32xf32>
    %455 = vector.shape_cast %454 : vector<1x2x32xf32> to vector<2x32xf32>
    %456 = vector.shape_cast %444 : vector<2x32xf32> to vector<1x2x32xf32>
    tpu.vector_store %arg15[%c1_137, %c0_138, %c0_139], %456 {strides = array<i32>} : memref<2x2x32xf32, #tpu.memory_space<vmem>>, vector<1x2x32xf32>,
    return
  }
}

</mosaic_0001>

<bundles_post_ra>
// kernel: stochastic_lstm_forward.1
= control target key start
LH: loop header
LB: loop body
LE: loop exit
PB: predicated region body
PF: predicated region fallthrough
CT: control target
= control target key end

     0   :  { %21 = vsyncpa [#allocation5], 0  ;;  %s2902_s22 = smov 16   ;;  %v2903_v9 = vmov 0.0   ;;  %s3984_s0 = inlined_call_operand.vmem [shape: f32[8,2,16], index: 0, kind: input, shape index: {}]   ;;  %s3985_s1 = inlined_call_operand.vmem [shape: f32[2,64], index: 1, kind: input, shape index: {}]   ;;  %s3986_s2 = inlined_call_operand.vmem [shape: bf16[64,128], index: 2, kind: input, shape index: {}]   ;;  %s3987_s3 = inlined_call_operand.vmem [shape: f32[1,128], index: 3, kind: input, shape index: {}]   ;;  %s3988_s4 = inlined_call_operand.vmem [shape: f32[2,128], index: 4, kind: input, shape index: {}]   ;;  %s3989_s5 = inlined_call_operand.vmem [shape: bf16[128,128], index: 5, kind: input, shape index: {}]   ;;  %s3990_s6 = inlined_call_operand.vmem [shape: f32[2,128], index: 6, kind: input, shape index: {}]   ;;  %s3991_s7 = inlined_call_operand.vmem [shape: bf16[128,128], index: 7, kind: input, shape index: {}]   ;;  %s3992_s8 = inlined_call_operand.vmem [shape: f32[1,128], index: 8, kind: input, shape index: {}]   ;;  %s3993_s9 = inlined_call_operand.vmem [shape: f32[2,128], index: 9, kind: input, shape index: {}]   ;;  %s3994_s10 = inlined_call_operand.vmem [shape: bf16[128,128], index: 10, kind: input, shape index: {}]   ;;  %s3995_s11 = inlined_call_operand.vmem [shape: f32[2,32], index: 11, kind: input, shape index: {}, may-alias: {11,12}]   ;;  %s3996_s12 = inlined_call_operand.vmem [shape: f32[2,32], index: 12, kind: input, shape index: {}, may-alias: {11,12}]   ;;  %s3997_s13 = inlined_call_operand.hbm [shape: f32[8,2,32], index: 13, kind: output, shape index: {0}]   ;;  %s3998_s14 = inlined_call_operand.hbm [shape: f32[2,2,32], index: 14, kind: output, shape index: {1}]   ;;  %s3999_s15 = inlined_call_operand.hbm [shape: f32[2,2,32], index: 15, kind: output, shape index: {2}]  }
   0x1   :  { %v2998_v0 = vld [vmem:[%s3984_s0 + $0x4] sm:$0x3]  ;;  %v3003_v1 = vld [vmem:[%s3984_s0] sm:$0x3]  ;;  %v3010_v2 = vld [vmem:[%s3984_s0 + $0x6] sm:$0x3]  ;;  %2387 = vmatprep.subr.bf16.mxu1 %v2903_v9  ;;  %2375 = vmatprep.subr.bf16.mxu0 %v2903_v9 }
   0x2   :  { %77 = vrot.lane.b32.xlu1 %v2998_v0, %s2902_s22  ;;  %73 = vrot.lane.b32.xlu0 %v3003_v1, %s2902_s22  ;;  %v3015_v3 = vld [vmem:[%s3984_s0 + $0x2] sm:$0x3]  ;;  %v3020_v4 = vld [vmem:[%s3984_s0 + $0xa] sm:$0x3] }
   0x3   :  { %v3025_v5 = vld [vmem:[%s3984_s0 + $0x8] sm:$0x3]  ;;  %v3032_v6 = vld [vmem:[%s3984_s0 + $0xe] sm:$0x3]  ;;  %v3037_v7 = vld [vmem:[%s3984_s0 + $0xc] sm:$0x3] }
   0x4   :  { %v3046_v8 = vld [vmem:[%s3989_s5] sm:$0xff]   ;;  %s2904_s0 = smov 32   ;;  %v3059_v10 = vld [vmem:[%s3989_s5 + $0x8] sm:$0xff]   ;;  %v3070_v11 = vld [vmem:[%s3989_s5 + $0x10] sm:$0xff]  }
   0x5   :  { %2388 = vmatpush3.bf16.msra.mxu1 %v3046_v8  ;;  %v2743_v12 = vld [vmem:[%s3986_s2] sm:$0xff]   ;;  %v3084_v13 = vld [vmem:[%s3989_s5 + $0x18] sm:$0xff]  }
   0x6   :  { %79 = vrot.lane.b32.xlu1 %v3010_v2, %s2902_s22  ;;  %75 = vrot.lane.b32.xlu0 %v3015_v3, %s2902_s22 }
   0x7   :  { %2389 = vmatprep.subr.bf16.mxu1 %v2903_v9 }
   0x9   :  { %2390 = vmatpush3.bf16.msra.mxu1 %v3059_v10 }
   0xa   :  { %83 = vrot.lane.b32.xlu1 %v3020_v4, %s2902_s22  ;;  %81 = vrot.lane.b32.xlu0 %v3025_v5, %s2902_s22 }
   0xb   :  { %2391 = vmatprep.subr.bf16.mxu1 %v2903_v9 }
   0xd   :  { %2392 = vmatpush3.bf16.msra.mxu1 %v3070_v11 }
   0xe   :  { %87 = vrot.lane.b32.xlu1 %v3032_v6, %s2902_s22  ;;  %85 = vrot.lane.b32.xlu0 %v3037_v7, %s2902_s22 }
   0xf   :  { %2393 = vmatprep.subr.bf16.mxu1 %v2903_v9 }
  0x12   :  { %99 = vrot.lane.b32.xlu1 %v3015_v3, %s2904_s0  ;;  %97 = vrot.lane.b32.xlu0 %v3003_v1, %s2904_s0 }
  0x16   :  { %103 = vrot.lane.b32.xlu1 %v3010_v2, %s2904_s0  ;;  %101 = vrot.lane.b32.xlu0 %v2998_v0, %s2904_s0 }
  0x1a   :  { %107 = vrot.lane.b32.xlu1 %v3020_v4, %s2904_s0  ;;  %105 = vrot.lane.b32.xlu0 %v3025_v5, %s2904_s0 }
  0x1b   :  { %22 = vsyncpa [#allocation7], 0  ;;  %2376 = vmatpush3.bf16.msra.mxu0 %v2743_v12  ;;  %2394 = vmatpush3.bf16.msra.mxu1 %v3084_v13  ;;  %v2745_v14 = vld [vmem:[%s3986_s2 + $0x8] sm:$0xff]   ;;  %v3099_v15 = vld [vmem:[%s3989_s5 + $0x20] sm:$0xff]   ;;  %s2905_s19 = smov 48   ;;  %vm2906_vm0 = vmmov 0   ;;  %v50_v47 = vlaneseq }
  0x1c   :  { %2377 = vmatprep.subr.bf16.mxu0 %v2903_v9  ;;  %2395 = vmatprep.subr.bf16.mxu1 %v2903_v9  ;;  %v2747_v16 = vld [vmem:[%s3986_s2 + $0x10] sm:$0xff]   ;;  %v3112_v17 = vld [vmem:[%s3989_s5 + $0x28] sm:$0xff]   ;;  %v2749_v18 = vld [vmem:[%s3986_s2 + $0x18] sm:$0xff]   ;;  %s2908_s16 = smov 96   ;;  %vm145_vm1 = vcmask 130048   ;;  %vm154_vm2 = vcmask 261120  }
  0x1d   :  { %v3125_v19 = vld [vmem:[%s3989_s5 + $0x30] sm:$0xff]   ;;  %2383 = vmatprep.mubr.msk.bf16.mxu0 %vm2906_vm0, %v2903_v9  ;;  %v3136_v20 = vld [vmem:[%s3989_s5 + $0x38] sm:$0xff]   ;;  %2403 = vmatprep.mubr.msk.bf16.mxu1 %vm2906_vm0, %v2903_v9  ;;  %v3146_v21 = vld [vmem:[%s3995_s11] sm:$0x3]  ;;  %s2907_s5 = smov 64   ;;  %vm163_vm3 = vcmask 392192  }
  0x1e   :  { %111 = vrot.lane.b32.xlu1 %v3032_v6, %s2904_s0  ;;  %109 = vrot.lane.b32.xlu0 %v3037_v7, %s2904_s0  ;;  %v56_v22 = vld [vmem:[%s3996_s12] sm:$0x3]  ;;  %v2909_v45 = vmov 1983009808   ;;  %vm265_vm4 = vcmask 523264   ;;  %vm391_vm5 = vcmask 785408  }
  0x1f   :  { %2378 = vmatpush3.bf16.msra.mxu0 %v2745_v14  ;;  %2396 = vmatpush3.bf16.msra.mxu1 %v3099_v15  ;;  %v192_v46 = vunpack.c.l.s4 %v2909_v45  ;;  %v172_v58 = vld [vmem:[%s3985_s1] sm:$0x3]  ;;  %vm514_vm7 = vcmask 254976   ;;  %s2912_s12 = smov [#allocation4]  }
  0x20   :  { %2379 = vmatprep.subr.bf16.mxu0 %v2903_v9  ;;  %2397 = vmatprep.subr.bf16.mxu1 %v2903_v9  ;;  %s2136_s1 = sshll.u32 %s2912_s12, 4  ;;  %s3922_s1 = int_to_ptr.vmem [resolvable:$true] %s2136_s1 }
  0x22   :  { %123 = vrot.lane.b32.xlu1 %v3015_v3, %s2905_s19  ;;  %121 = vrot.lane.b32.xlu0 %v3003_v1, %s2905_s19 }
  0x23   :  { %2380 = vmatpush3.bf16.msra.mxu0 %v2747_v16  ;;  %2398 = vmatpush3.bf16.msra.mxu1 %v3112_v17 }
  0x24   :  { %2381 = vmatprep.subr.bf16.mxu0 %v2903_v9  ;;  %2399 = vmatprep.subr.bf16.mxu1 %v2903_v9 }
  0x26   :  { %127 = vrot.lane.b32.xlu1 %v3010_v2, %s2905_s19  ;;  %125 = vrot.lane.b32.xlu0 %v2998_v0, %s2905_s19 }
  0x27   :  { %2382 = vmatpush3.bf16.msra.mxu0 %v2749_v18  ;;  %2400 = vmatpush3.bf16.msra.mxu1 %v3125_v19 }
  0x28   :  { %2401 = vmatprep.subr.bf16.mxu1 %v2903_v9  ;;  %2407 = vmatprep.subr.bf16.mxu0 %v2903_v9 }
  0x2a   :  { %131 = vrot.lane.b32.xlu1 %v3020_v4, %s2905_s19  ;;  %129 = vrot.lane.b32.xlu0 %v3025_v5, %s2905_s19 }
  0x2b   :  { %2402 = vmatpush3.bf16.msra.mxu1 %v3136_v20 }
  0x2c   :  { %2427 = vmatprep.subr.bf16.mxu1 %v2903_v9 }
  0x2e   :  { %135 = vrot.lane.b32.xlu1 %v3032_v6, %s2905_s19  ;;  %133 = vrot.lane.b32.xlu0 %v3037_v7, %s2905_s19  ;;  %s2913_s19 = smov [#allocation8]  }
  0x32   :  { %380 = vrot.lane.b32.xlu0 %v3146_v21, %s2904_s0  ;;  %383 = vrot.lane.b32.xlu1 %v3146_v21, %s2907_s5 }
  0x36   :  { %386 = vrot.lane.b32.xlu0 %v3146_v21, %s2908_s16 }
  0x3a   :  { %490 = vrot.lane.b32.xlu0 %v56_v22, %s2904_s0 }
  0x74   :  { %v78_v23 = vpop.permute.xlu1 %77  ;;  %v74_v24 = vpop.permute.xlu0 %73 }
  0x75   :  { %v148_v41 = vsel %vm145_vm1, %v2998_v0, %v78_v23  ;;  %v146_v50 = vsel %vm145_vm1, %v3003_v1, %v74_v24 }
  0x78   :  { %v80_v25 = vpop.permute.xlu1 %79  ;;  %v76_v26 = vpop.permute.xlu0 %75 }
  0x79   :  { %v149_v42 = vsel %vm145_vm1, %v3010_v2, %v80_v25  ;;  %v147_v51 = vsel %vm145_vm1, %v3015_v3, %v76_v26  ;;  %v193_v3 = vunpack.c.0.s8 %v192_v46 }
  0x7c   :  { %v84_v27 = vpop.permute.xlu1 %83  ;;  %v82_v28 = vpop.permute.xlu0 %81 }
  0x7d   :  { %v151_v56 = vsel %vm145_vm1, %v3020_v4, %v84_v27  ;;  %v150_v57 = vsel %vm145_vm1, %v3025_v5, %v82_v28  ;;  %v195_v4 = vshrl.u32 %v50_v47, 7 }
  0x80   :  { %v88_v29 = vpop.permute.xlu1 %87  ;;  %v86_v30 = vpop.permute.xlu0 %85 }
  0x81   :  { %v153_v23 = vsel %vm145_vm1, %v3032_v6, %v88_v29  ;;  %v152_v24 = vsel %vm145_vm1, %v3037_v7, %v86_v30 }
  0x84   :  { %v100_v31 = vpop.permute.xlu1 %99  ;;  %v98_v32 = vpop.permute.xlu0 %97 }
  0x85   :  { %v156_v54 = vsel %vm154_vm2, %v147_v51, %v100_v31  ;;  %v155_v55 = vsel %vm154_vm2, %v146_v50, %v98_v32  ;;  %v3194_v32 = vsub.s32 %v193_v3, %v195_v4 }
  0x88   :  { %v104_v33 = vpop.permute.xlu1 %103  ;;  %v102_v34 = vpop.permute.xlu0 %101 }
  0x89   :  { %v158_v43 = vsel %vm154_vm2, %v149_v42, %v104_v33  ;;  %v157_v44 = vsel %vm154_vm2, %v148_v41, %v102_v34 }
  0x8c   :  { %v108_v35 = vpop.permute.xlu1 %107  ;;  %v106_v36 = vpop.permute.xlu0 %105 }
  0x8d   :  { %v160_v61 = vsel %vm154_vm2, %v151_v56, %v108_v35  ;;  %v159_v62 = vsel %vm154_vm2, %v150_v57, %v106_v36  ;;  %v51_v57 = vand.u32 127, %v50_v47 }
  0x8f   :  { %vm52_vm6 = vcmp.lt.s32.totalorder %v51_v57, 96 }
  0x90   :  { %v112_v37 = vpop.permute.xlu1 %111  ;;  %v110_v38 = vpop.permute.xlu0 %109 }
  0x91   :  { %v162_v25 = vsel %vm154_vm2, %v153_v23, %v112_v37  ;;  %v161_v26 = vsel %vm154_vm2, %v152_v24, %v110_v38 }
  0x94   :  { %v124_v39 = vpop.permute.xlu1 %123  ;;  %v122_v40 = vpop.permute.xlu0 %121 }
  0x95   :  { %v165_v59 = vsel %vm163_vm3, %v156_v54, %v124_v39  ;;  %v164_v60 = vsel %vm163_vm3, %v155_v55, %v122_v40 }
  0x96   :  { %v174_v14 = vmul.f32 %v172_v58, %v165_v59  ;;  %v173_v16 = vmul.f32 %v172_v58, %v164_v60 }
  0x98   :  { %v128_v48 = vpop.permute.xlu1 %127  ;;  %v126_v49 = vpop.permute.xlu0 %125  ;;  %v189_v35 = vcombine.low %v173_v16, %v174_v14 }
  0x99   :  { %v167_v52 = vsel %vm163_vm3, %v158_v43, %v128_v48  ;;  %v166_v53 = vsel %vm163_vm3, %v157_v44, %v126_v49  ;;  %v3208_v44 = vld [vmem:[%s3988_s4] sm:$0x3]  ;;  %s2160_s4 = sshll.u32 %s2913_s19, 4  ;;  %s3926_s4 = int_to_ptr.vmem [resolvable:$true] %s2160_s4 }
  0x9a   :  { %v176_v63 = vmul.f32 %v172_v58, %v167_v52  ;;  %v175_v0 = vmul.f32 %v172_v58, %v166_v53  ;;  %v197_v40 = vrot.slane %v189_v35, %v3194_v32  ;;  %v2178_v52 = vld [vmem:[%s3987_s3] ss:$0 sm:$0xff] }
  0x9c   :  { %v132_v1 = vpop.permute.xlu1 %131  ;;  %v130_v2 = vpop.permute.xlu0 %129  ;;  %v190_v27 = vcombine.low %v175_v0, %v176_v63 }
  0x9d   :  { %v169_v5 = vsel %vm163_vm3, %v160_v61, %v132_v1  ;;  %v168_v12 = vsel %vm163_vm3, %v159_v62, %v130_v2 }
  0x9e   :  { %v178_v18 = vmul.f32 %v172_v58, %v169_v5  ;;  %v177_v22 = vmul.f32 %v172_v58, %v168_v12  ;;  %v204_v7 = vrot.slane %v190_v27, %v3194_v32  ;;  %v3263_v27 = vsel %vm52_vm6, 0.5, %v2903_v9 }
  0xa0   :  { %v136_v28 = vpop.permute.xlu1 %135  ;;  %v134_v31 = vpop.permute.xlu0 %133  ;;  %v206_v36 = vcombine.low %v177_v22, %v178_v18  ;;  %v205_v45 = vcombine.low %v197_v40, %v204_v7  ;;  %v2910_v18 = vmov 1.0  }
  0xa1   :  { %v171_v33 = vsel %vm163_vm3, %v162_v25, %v136_v28  ;;  %v170_v34 = vsel %vm163_vm3, %v161_v26, %v134_v31  ;;  %v3258_v22 = vsel %vm52_vm6, 0.5, %v2910_v18 }
  0xa2   :  { %v180_v39 = vmul.f32 %v172_v58, %v171_v33  ;;  %v179_v6 = vmul.f32 %v172_v58, %v170_v34  ;;  %v214_v41 = vrot.slane %v206_v36, %v3194_v32 }
  0xa4   :  { %v207_v29 = vcombine.low %v179_v6, %v180_v39  ;;  %v381_v30 = vpop.permute.xlu0 %380  ;;  %v384_v37 = vpop.permute.xlu1 %383 }
  0xa5   :  { %v389_v38 = vsel %vm154_vm2, %v3146_v21, %v381_v30 }
  0xa6   :  { %v221_v42 = vrot.slane %v207_v29, %v3194_v32  ;;  %v390_v43 = vsel %vm265_vm4, %v389_v38, %v384_v37 }
  0xa8   :  { %v222_v46 = vcombine.low %v214_v41, %v221_v42  ;;  %v387_v48 = vpop.permute.xlu0 %386 }
  0xa9   :  { %v392_v49 = vsel %vm391_vm5, %v390_v43, %v387_v48 }
  0xaa   :  { %v393_v21 = vmul.f32 %v392_v49, %v3208_v44  ;;  %v225_v50 = vpack.c.bf16 %v222_v46, %v205_v45 }
  0xac   :  { %v394_v51 = vpack.c.bf16 %v393_v21, %v393_v21  ;;  %2384 = vmatmul.mubr.msk.bf16.vlgmr.msra.gmra.mrb[0].mxu0 %vm265_vm4, %v225_v50  ;;  %v491_v35 = vpop.permute.xlu0 %490 }
  0xad   :  { %2408 = vmatpush3.bf16.msra.mxu0 %v3046_v8  ;;  %2423 = vmatprep.mubr.msk.bf16.mxu0 %vm2906_vm0, %v2903_v9 }
  0xae   :  { %2404 = vmatmul.mubr.bf16.vlgmr.msra.gmra.mrb[0].mxu1 %v394_v51  ;;  %2409 = vmatprep.subr.bf16.mxu0 %v2903_v9 }
  0xaf   :  { %2428 = vmatpush3.bf16.msra.mxu1 %v3046_v8  ;;  %2443 = vmatprep.mubr.msk.bf16.mxu1 %vm2906_vm0, %v2903_v9 }
  0xb0   :  { %2429 = vmatprep.subr.bf16.mxu1 %v2903_v9 }
  0xb1   :  { %2410 = vmatpush3.bf16.msra.mxu0 %v3059_v10 }
  0xb2   :  { %2411 = vmatprep.subr.bf16.mxu0 %v2903_v9 }
  0xb3   :  { %2430 = vmatpush3.bf16.msra.mxu1 %v3059_v10 }
  0xb4   :  { %2431 = vmatprep.subr.bf16.mxu1 %v2903_v9 }
  0xb5   :  { %2412 = vmatpush3.bf16.msra.mxu0 %v3070_v11 }
  0xb6   :  { %2413 = vmatprep.subr.bf16.mxu0 %v2903_v9 }
  0xb7   :  { %2432 = vmatpush3.bf16.msra.mxu1 %v3070_v11 }
  0xb8   :  { %2433 = vmatprep.subr.bf16.mxu1 %v2903_v9 }
  0xb9   :  { %2414 = vmatpush3.bf16.msra.mxu0 %v3084_v13 }
  0xba   :  { %2415 = vmatprep.subr.bf16.mxu0 %v2903_v9 }
  0xbb   :  { %2434 = vmatpush3.bf16.msra.mxu1 %v3084_v13 }
  0xbc   :  { %2435 = vmatprep.subr.bf16.mxu1 %v2903_v9 }
  0xbd   :  { %2416 = vmatpush3.bf16.msra.mxu0 %v3099_v15 }
  0xbe   :  { %2417 = vmatprep.subr.bf16.mxu0 %v2903_v9 }
  0xbf   :  { %2436 = vmatpush3.bf16.msra.mxu1 %v3099_v15 }
  0xc0   :  { %2437 = vmatprep.subr.bf16.mxu1 %v2903_v9 }
  0xc1   :  { %2418 = vmatpush3.bf16.msra.mxu0 %v3112_v17 }
  0xc2   :  { %2419 = vmatprep.subr.bf16.mxu0 %v2903_v9 }
  0xc3   :  { %2438 = vmatpush3.bf16.msra.mxu1 %v3112_v17 }
  0xc4   :  { %2439 = vmatprep.subr.bf16.mxu1 %v2903_v9 }
  0xc5   :  { %2420 = vmatpush3.bf16.msra.mxu0 %v3125_v19 }
  0xc6   :  { %2421 = vmatprep.subr.bf16.mxu0 %v2903_v9 }
  0xc7   :  { %2440 = vmatpush3.bf16.msra.mxu1 %v3125_v19 }
  0xc8   :  { %2441 = vmatprep.subr.bf16.mxu1 %v2903_v9 }
  0xc9   :  { %2422 = vmatpush3.bf16.msra.mxu0 %v3136_v20 }
  0xca   :  { %2447 = vmatprep.subr.bf16.mxu0 %v2903_v9 }
  0xcb   :  { %2442 = vmatpush3.bf16.msra.mxu1 %v3136_v20 }
  0xcc   :  { %2467 = vmatprep.subr.bf16.mxu1 %v2903_v9 }
 0x17f   :  { %v303_v53 = vpop.f32.mrb[0].mxu0 }
 0x180   :  { %v304_v54 = vadd.f32 %v2178_v52, %v303_v53  ;;  %v2385_v55 = vpop.f32.mrb[1].mxu0 }
 0x181   :  { %v306_v56 = vpop.f32.mrb[2].mxu0  ;;  %v477_v58 = vpop.f32.mrb[0].mxu1 }
 0x182   :  { %v312_v59 = vcombine.high %v304_v54, %v304_v54  ;;  %v319_v60 = vrot.slane %v304_v54, %v3194_v32  ;;  %2184 = vst.sshfl [vmem:[#allocation2] sm:$0x3 pattern:$0x76325410] %v304_v54  ;;  %v307_v61 = vadd.f32 %v2178_v52, %v306_v56  ;;  %v2386_v62 = vpop.f32.mrb[3].mxu0  ;;  %v2405_v63 = vpop.f32.mrb[1].mxu1 }
 0x183   :  { %v480_v0 = vpop.f32.mrb[2].mxu1 }
 0x184   :  { %v326_v1 = vrot.slane %v312_v59, %v3194_v32  ;;  %v327_v2 = vcombine.high %v319_v60, %v319_v60  ;;  %2185 = vst.sshfl [vmem:[#allocation2 + $0x4] sm:$0x3 pattern:$0x76325410] %v312_v59  ;;  %v329_v3 = vcombine.high %v307_v61, %v307_v61  ;;  %v336_v4 = vrot.slane %v307_v61, %v3194_v32  ;;  %v2406_v5 = vpop.f32.mrb[3].mxu1 }
 0x185   :  { %2186 = vst.sshfl [vmem:[#allocation2 + $0x8] sm:$0x3 pattern:$0x76325410] %v307_v61 }
 0x186   :  { %v328_v47 = vcombine.high %v326_v1, %v326_v1  ;;  %355 = vst [vmem:[#allocation2 + $0x2] sm:$0x3] %v327_v2  ;;  %v343_v12 = vrot.slane %v329_v3, %v3194_v32  ;;  %v344_v14 = vcombine.high %v336_v4, %v336_v4  ;;  %2187 = vst.sshfl [vmem:[#allocation2 + $0xc] sm:$0x3 pattern:$0x76325410] %v329_v3 }
 0x188   :  { %357 = vst [vmem:[#allocation2 + $0x6] sm:$0x3] %v328_v47  ;;  %v345_v16 = vcombine.high %v343_v12, %v343_v12  ;;  %359 = vst [vmem:[#allocation2 + $0xa] sm:$0x3] %v344_v14 }
 0x189   :  { %v483_v23 = vld [vmem:[#allocation2] sm:$0x3] }
 0x18a   :  { %361 = vst [vmem:[#allocation2 + $0xe] sm:$0x3] %v345_v16  ;;  %v484_v24 = vadd.f32 %v483_v23, %v477_v58 }
 0x18b   :  { %v649_v18 = vld [vmem:[#allocation2 + $0x4] sm:$0x3] }
 0x18c   :  { %v485_v25 = vmul.f32 %v484_v24, %v3258_v22 }
 0x18d   :  { %v568_v49 = vld [vmem:[#allocation2 + $0x2] sm:$0x3] }
 0x18e   :  { %2768 = vtanh.f32 %v485_v25 }
 0x198   :  { %v2769_v26 = vpop.eup %2768 }
 0x199   :  { %v487_v28 = vmul.f32 %v2769_v26, %v3258_v22 }
 0x19b   :  { %v488_v31 = vadd.f32 %v487_v28, %v3263_v27 }
 0x19d   :  { %495 = vrot.lane.b32.xlu1 %v488_v31, %s2904_s0  ;;  %v493_v36 = vmul.f32 %v491_v35, %v488_v31 }
 0x20f   :  { %v496_v33 = vpop.permute.xlu1 %495 }
 0x210   :  { %v498_v34 = vmul.f32 %v496_v33, %v488_v31 }
 0x212   :  { %500 = vrot.lane.b32.xlu1 %v498_v34, %s2904_s0 }
 0x284   :  { %v501_v39 = vpop.permute.xlu1 %500 }
 0x285   :  { %v503_v6 = vadd.f32 %v501_v39, %v493_v36 }
 0x287   :  { %2770 = vtanh.f32 %v503_v6 }
 0x291   :  { %v2771_v7 = vpop.eup %2770 }
 0x292   :  { %506 = vrot.lane.b32.xlu0 %v2771_v7, %s2904_s0 }
 0x304   :  { %v507_v29 = vpop.permute.xlu0 %506 }
 0x305   :  { %v509_v30 = vmul.f32 %v507_v29, %v488_v31 }
 0x307   :  { %516 = vrot.lane.b32.xlu0 %v509_v30, %s2908_s16  ;;  %511 = vrot.lane.b32.xlu1 %v509_v30, %s2907_s5 }
 0x30b   :  { %519 = vrot.lane.b32.xlu1 %v509_v30, %s2904_s0 }
 0x379   :  { %v517_v37 = vpop.permute.xlu0 %516  ;;  %v512_v38 = vpop.permute.xlu1 %511 }
 0x37a   :  { %515 = vst.msk [vmem:[#allocation3] sm:$0x3] %vm514_vm7, %v512_v38  ;;  %v522_v40 = vsel %vm154_vm2, %v512_v38, %v517_v37 }
 0x37b   :  { %v523_v41 = vsel %vm265_vm4, %v522_v40, %v509_v30 }
 0x37d   :  { %v520_v42 = vpop.permute.xlu1 %519 }
 0x37e   :  { %v524_v43 = vsel %vm391_vm5, %v523_v41, %v520_v42 }
 0x37f   :  { %v525_v45 = vmul.f32 %v524_v43, %v3208_v44 }
 0x381   :  { %v526_v46 = vpack.c.bf16 %v525_v45, %v525_v45 }
 0x383   :  { %2424 = vmatmul.mubr.bf16.vlgmr.msra.gmra.mrb[4].mxu0 %v526_v46 }
 0x384   :  { %2448 = vmatpush3.bf16.msra.mxu0 %v3046_v8  ;;  %2463 = vmatprep.mubr.msk.bf16.mxu0 %vm2906_vm0, %v2903_v9 }
 0x385   :  { %2449 = vmatprep.subr.bf16.mxu0 %v2903_v9 }
 0x388   :  { %2450 = vmatpush3.bf16.msra.mxu0 %v3059_v10 }
 0x389   :  { %2451 = vmatprep.subr.bf16.mxu0 %v2903_v9 }
 0x38c   :  { %2452 = vmatpush3.bf16.msra.mxu0 %v3070_v11 }
 0x38d   :  { %2453 = vmatprep.subr.bf16.mxu0 %v2903_v9 }
 0x390   :  { %2454 = vmatpush3.bf16.msra.mxu0 %v3084_v13 }
 0x391   :  { %2455 = vmatprep.subr.bf16.mxu0 %v2903_v9 }
 0x394   :  { %2456 = vmatpush3.bf16.msra.mxu0 %v3099_v15 }
 0x395   :  { %2457 = vmatprep.subr.bf16.mxu0 %v2903_v9 }
 0x398   :  { %2458 = vmatpush3.bf16.msra.mxu0 %v3112_v17 }
 0x399   :  { %2459 = vmatprep.subr.bf16.mxu0 %v2903_v9 }
 0x39c   :  { %2460 = vmatpush3.bf16.msra.mxu0 %v3125_v19 }
 0x39d   :  { %2461 = vmatprep.subr.bf16.mxu0 %v2903_v9 }
 0x3a0   :  { %2462 = vmatpush3.bf16.msra.mxu0 %v3136_v20 }
 0x3a1   :  { %2487 = vmatprep.subr.bf16.mxu0 %v2903_v9 }
 0x456   :  { %v561_v48 = vpop.f32.mrb[4].mxu0 }
 0x457   :  { %v569_v21 = vadd.f32 %v568_v49, %v561_v48  ;;  %v2425_v50 = vpop.f32.mrb[5].mxu0 }
 0x458   :  { %v564_v51 = vpop.f32.mrb[6].mxu0 }
 0x459   :  { %v570_v52 = vmul.f32 %v569_v21, %v3258_v22  ;;  %v2426_v53 = vpop.f32.mrb[7].mxu0  ;;  %v730_v21 = vld [vmem:[#allocation2 + $0x6] sm:$0x3] }
 0x45b   :  { %2772 = vtanh.f32 %v570_v52 }
 0x465   :  { %v2773_v54 = vpop.eup %2772 }
 0x466   :  { %v572_v55 = vmul.f32 %v2773_v54, %v3258_v22 }
 0x468   :  { %v573_v56 = vadd.f32 %v572_v55, %v3263_v27 }
 0x46a   :  { %576 = vrot.lane.b32.xlu0 %v573_v56, %s2904_s0  ;;  %v574_v59 = vmul.f32 %v573_v56, %v503_v6 }
 0x4dc   :  { %v577_v57 = vpop.permute.xlu0 %576 }
 0x4dd   :  { %v579_v58 = vmul.f32 %v577_v57, %v573_v56 }
 0x4df   :  { %581 = vrot.lane.b32.xlu1 %v579_v58, %s2904_s0 }
 0x551   :  { %v582_v60 = vpop.permute.xlu1 %581 }
 0x552   :  { %v584_v61 = vadd.f32 %v582_v60, %v574_v59 }
 0x554   :  { %2774 = vtanh.f32 %v584_v61 }
 0x55e   :  { %v2775_v62 = vpop.eup %2774 }
 0x55f   :  { %587 = vrot.lane.b32.xlu0 %v2775_v62, %s2904_s0 }
 0x5d1   :  { %v588_v63 = vpop.permute.xlu0 %587 }
 0x5d2   :  { %v590_v0 = vmul.f32 %v588_v63, %v573_v56 }
 0x5d4   :  { %597 = vrot.lane.b32.xlu0 %v590_v0, %s2908_s16  ;;  %592 = vrot.lane.b32.xlu1 %v590_v0, %s2907_s5 }
 0x5d8   :  { %600 = vrot.lane.b32.xlu1 %v590_v0, %s2904_s0 }
 0x646   :  { %v598_v1 = vpop.permute.xlu0 %597  ;;  %v593_v2 = vpop.permute.xlu1 %592 }
 0x647   :  { %596 = vst.msk [vmem:[#allocation3 + $0x2] sm:$0x3] %vm514_vm7, %v593_v2  ;;  %v603_v3 = vsel %vm154_vm2, %v593_v2, %v598_v1 }
 0x648   :  { %v604_v4 = vsel %vm265_vm4, %v603_v3, %v590_v0 }
 0x64a   :  { %v601_v5 = vpop.permute.xlu1 %600 }
 0x64b   :  { %v605_v47 = vsel %vm391_vm5, %v604_v4, %v601_v5 }
 0x64c   :  { %v606_v12 = vmul.f32 %v605_v47, %v3208_v44 }
 0x64e   :  { %v607_v14 = vpack.c.bf16 %v606_v12, %v606_v12 }
 0x650   :  { %2444 = vmatmul.mubr.bf16.vlgmr.msra.gmra.mrb[4].mxu1 %v607_v14 }
 0x651   :  { %2468 = vmatpush3.bf16.msra.mxu1 %v3046_v8  ;;  %2483 = vmatprep.mubr.msk.bf16.mxu1 %vm2906_vm0, %v2903_v9 }
 0x652   :  { %2469 = vmatprep.subr.bf16.mxu1 %v2903_v9 }
 0x655   :  { %2470 = vmatpush3.bf16.msra.mxu1 %v3059_v10 }
 0x656   :  { %2471 = vmatprep.subr.bf16.mxu1 %v2903_v9 }
 0x659   :  { %2472 = vmatpush3.bf16.msra.mxu1 %v3070_v11 }
 0x65a   :  { %2473 = vmatprep.subr.bf16.mxu1 %v2903_v9 }
 0x65d   :  { %2474 = vmatpush3.bf16.msra.mxu1 %v3084_v13 }
 0x65e   :  { %2475 = vmatprep.subr.bf16.mxu1 %v2903_v9 }
 0x661   :  { %2476 = vmatpush3.bf16.msra.mxu1 %v3099_v15 }
 0x662   :  { %2477 = vmatprep.subr.bf16.mxu1 %v2903_v9 }
 0x665   :  { %2478 = vmatpush3.bf16.msra.mxu1 %v3112_v17 }
 0x666   :  { %2479 = vmatprep.subr.bf16.mxu1 %v2903_v9 }
 0x669   :  { %2480 = vmatpush3.bf16.msra.mxu1 %v3125_v19 }
 0x66a   :  { %2481 = vmatprep.subr.bf16.mxu1 %v2903_v9 }
 0x66d   :  { %2482 = vmatpush3.bf16.msra.mxu1 %v3136_v20 }
 0x66e   :  { %2507 = vmatprep.subr.bf16.mxu1 %v2903_v9 }
 0x723   :  { %v642_v16 = vpop.f32.mrb[4].mxu1 }
 0x724   :  { %v650_v23 = vadd.f32 %v649_v18, %v642_v16  ;;  %v2445_v24 = vpop.f32.mrb[5].mxu1 }
 0x725   :  { %v645_v25 = vpop.f32.mrb[6].mxu1 }
 0x726   :  { %v651_v26 = vmul.f32 %v650_v23, %v3258_v22  ;;  %v2446_v28 = vpop.f32.mrb[7].mxu1  ;;  %v811_v23 = vld [vmem:[#allocation2 + $0x8] sm:$0x3] }
 0x728   :  { %2776 = vtanh.f32 %v651_v26 }
 0x732   :  { %v2777_v31 = vpop.eup %2776 }
 0x733   :  { %v653_v33 = vmul.f32 %v2777_v31, %v3258_v22 }
 0x735   :  { %v654_v34 = vadd.f32 %v653_v33, %v3263_v27 }
 0x737   :  { %657 = vrot.lane.b32.xlu0 %v654_v34, %s2904_s0  ;;  %v655_v39 = vmul.f32 %v654_v34, %v584_v61 }
 0x7a9   :  { %v658_v35 = vpop.permute.xlu0 %657 }
 0x7aa   :  { %v660_v36 = vmul.f32 %v658_v35, %v654_v34 }
 0x7ac   :  { %662 = vrot.lane.b32.xlu1 %v660_v36, %s2904_s0 }
 0x81e   :  { %v663_v6 = vpop.permute.xlu1 %662 }
 0x81f   :  { %v665_v7 = vadd.f32 %v663_v6, %v655_v39 }
 0x821   :  { %2778 = vtanh.f32 %v665_v7 }
 0x82b   :  { %v2779_v29 = vpop.eup %2778 }
 0x82c   :  { %668 = vrot.lane.b32.xlu0 %v2779_v29, %s2904_s0 }
 0x89e   :  { %v669_v30 = vpop.permute.xlu0 %668 }
 0x89f   :  { %v671_v37 = vmul.f32 %v669_v30, %v654_v34 }
 0x8a1   :  { %678 = vrot.lane.b32.xlu0 %v671_v37, %s2908_s16  ;;  %673 = vrot.lane.b32.xlu1 %v671_v37, %s2907_s5 }
 0x8a5   :  { %681 = vrot.lane.b32.xlu1 %v671_v37, %s2904_s0 }
 0x913   :  { %v679_v38 = vpop.permute.xlu0 %678  ;;  %v674_v40 = vpop.permute.xlu1 %673 }
 0x914   :  { %677 = vst.msk [vmem:[#allocation3 + $0x4] sm:$0x3] %vm514_vm7, %v674_v40  ;;  %v684_v41 = vsel %vm154_vm2, %v674_v40, %v679_v38 }
 0x915   :  { %v685_v42 = vsel %vm265_vm4, %v684_v41, %v671_v37 }
 0x917   :  { %v682_v43 = vpop.permute.xlu1 %681 }
 0x918   :  { %v686_v45 = vsel %vm391_vm5, %v685_v42, %v682_v43 }
 0x919   :  { %v687_v46 = vmul.f32 %v686_v45, %v3208_v44 }
 0x91b   :  { %v688_v48 = vpack.c.bf16 %v687_v46, %v687_v46 }
 0x91d   :  { %2464 = vmatmul.mubr.bf16.vlgmr.msra.gmra.mrb[8].mxu0 %v688_v48 }
 0x91e   :  { %2488 = vmatpush3.bf16.msra.mxu0 %v3046_v8  ;;  %2503 = vmatprep.mubr.msk.bf16.mxu0 %vm2906_vm0, %v2903_v9 }
 0x91f   :  { %2489 = vmatprep.subr.bf16.mxu0 %v2903_v9 }
 0x922   :  { %2490 = vmatpush3.bf16.msra.mxu0 %v3059_v10 }
 0x923   :  { %2491 = vmatprep.subr.bf16.mxu0 %v2903_v9 }
 0x926   :  { %2492 = vmatpush3.bf16.msra.mxu0 %v3070_v11 }
 0x927   :  { %2493 = vmatprep.subr.bf16.mxu0 %v2903_v9 }
 0x92a   :  { %2494 = vmatpush3.bf16.msra.mxu0 %v3084_v13 }
 0x92b   :  { %2495 = vmatprep.subr.bf16.mxu0 %v2903_v9 }
 0x92e   :  { %2496 = vmatpush3.bf16.msra.mxu0 %v3099_v15 }
 0x92f   :  { %2497 = vmatprep.subr.bf16.mxu0 %v2903_v9 }
 0x932   :  { %2498 = vmatpush3.bf16.msra.mxu0 %v3112_v17 }
 0x933   :  { %2499 = vmatprep.subr.bf16.mxu0 %v2903_v9 }
 0x936   :  { %2500 = vmatpush3.bf16.msra.mxu0 %v3125_v19 }
 0x937   :  { %2501 = vmatprep.subr.bf16.mxu0 %v2903_v9 }
 0x93a   :  { %2502 = vmatpush3.bf16.msra.mxu0 %v3136_v20 }
 0x93b   :  { %2527 = vmatprep.subr.bf16.mxu0 %v2903_v9 }
 0x9f0   :  { %v723_v49 = vpop.f32.mrb[8].mxu0 }
 0x9f1   :  { %v731_v50 = vadd.f32 %v730_v21, %v723_v49  ;;  %v2465_v51 = vpop.f32.mrb[9].mxu0 }
 0x9f2   :  { %v726_v52 = vpop.f32.mrb[10].mxu0 }
 0x9f3   :  { %v732_v53 = vmul.f32 %v731_v50, %v3258_v22  ;;  %v2466_v54 = vpop.f32.mrb[11].mxu0 }
 0x9f5   :  { %2780 = vtanh.f32 %v732_v53 }
 0x9ff   :  { %v2781_v55 = vpop.eup %2780 }
 0xa00   :  { %v734_v56 = vmul.f32 %v2781_v55, %v3258_v22 }
 0xa02   :  { %v735_v57 = vadd.f32 %v734_v56, %v3263_v27 }
 0xa04   :  { %738 = vrot.lane.b32.xlu0 %v735_v57, %s2904_s0  ;;  %v736_v60 = vmul.f32 %v735_v57, %v665_v7 }
 0xa76   :  { %v739_v58 = vpop.permute.xlu0 %738 }
 0xa77   :  { %v741_v59 = vmul.f32 %v739_v58, %v735_v57 }
 0xa79   :  { %743 = vrot.lane.b32.xlu1 %v741_v59, %s2904_s0 }
 0xaeb   :  { %v744_v61 = vpop.permute.xlu1 %743 }
 0xaec   :  { %v746_v62 = vadd.f32 %v744_v61, %v736_v60 }
 0xaee   :  { %2782 = vtanh.f32 %v746_v62 }
 0xaf8   :  { %v2783_v63 = vpop.eup %2782 }
 0xaf9   :  { %749 = vrot.lane.b32.xlu0 %v2783_v63, %s2904_s0 }
 0xb6b   :  { %v750_v0 = vpop.permute.xlu0 %749 }
 0xb6c   :  { %v752_v1 = vmul.f32 %v750_v0, %v735_v57 }
 0xb6e   :  { %759 = vrot.lane.b32.xlu0 %v752_v1, %s2908_s16  ;;  %754 = vrot.lane.b32.xlu1 %v752_v1, %s2907_s5 }
 0xb72   :  { %762 = vrot.lane.b32.xlu1 %v752_v1, %s2904_s0 }
 0xbe0   :  { %v760_v2 = vpop.permute.xlu0 %759  ;;  %v755_v3 = vpop.permute.xlu1 %754 }
 0xbe1   :  { %758 = vst.msk [vmem:[#allocation3 + $0x6] sm:$0x3] %vm514_vm7, %v755_v3  ;;  %v765_v4 = vsel %vm154_vm2, %v755_v3, %v760_v2 }
 0xbe2   :  { %v766_v5 = vsel %vm265_vm4, %v765_v4, %v752_v1  ;;  %v973_v4 = vld [vmem:[#allocation2 + $0xc] sm:$0x3] }
 0xbe4   :  { %v763_v47 = vpop.permute.xlu1 %762 }
 0xbe5   :  { %v767_v12 = vsel %vm391_vm5, %v766_v5, %v763_v47 }
 0xbe6   :  { %v768_v14 = vmul.f32 %v767_v12, %v3208_v44 }
 0xbe8   :  { %v769_v16 = vpack.c.bf16 %v768_v14, %v768_v14 }
 0xbea   :  { %2484 = vmatmul.mubr.bf16.vlgmr.msra.gmra.mrb[8].mxu1 %v769_v16 }
 0xbeb   :  { %2508 = vmatpush3.bf16.msra.mxu1 %v3046_v8  ;;  %2523 = vmatprep.mubr.msk.bf16.mxu1 %vm2906_vm0, %v2903_v9 }
 0xbec   :  { %2509 = vmatprep.subr.bf16.mxu1 %v2903_v9 }
 0xbef   :  { %2510 = vmatpush3.bf16.msra.mxu1 %v3059_v10 }
 0xbf0   :  { %2511 = vmatprep.subr.bf16.mxu1 %v2903_v9 }
 0xbf3   :  { %2512 = vmatpush3.bf16.msra.mxu1 %v3070_v11 }
 0xbf4   :  { %2513 = vmatprep.subr.bf16.mxu1 %v2903_v9 }
 0xbf7   :  { %2514 = vmatpush3.bf16.msra.mxu1 %v3084_v13 }
 0xbf8   :  { %2515 = vmatprep.subr.bf16.mxu1 %v2903_v9 }
 0xbfb   :  { %2516 = vmatpush3.bf16.msra.mxu1 %v3099_v15 }
 0xbfc   :  { %2517 = vmatprep.subr.bf16.mxu1 %v2903_v9 }
 0xbff   :  { %2518 = vmatpush3.bf16.msra.mxu1 %v3112_v17 }
 0xc00   :  { %2519 = vmatprep.subr.bf16.mxu1 %v2903_v9 }
 0xc03   :  { %2520 = vmatpush3.bf16.msra.mxu1 %v3125_v19 }
 0xc04   :  { %2521 = vmatprep.subr.bf16.mxu1 %v2903_v9 }
 0xc07   :  { %2522 = vmatpush3.bf16.msra.mxu1 %v3136_v20 }
 0xc08   :  { %2547 = vmatprep.subr.bf16.mxu1 %v2903_v9 }
 0xcbd   :  { %v804_v18 = vpop.f32.mrb[8].mxu1 }
 0xcbe   :  { %v812_v24 = vadd.f32 %v811_v23, %v804_v18  ;;  %v2485_v25 = vpop.f32.mrb[9].mxu1 }
 0xcbf   :  { %v807_v26 = vpop.f32.mrb[10].mxu1 }
 0xcc0   :  { %v813_v28 = vmul.f32 %v812_v24, %v3258_v22  ;;  %v2486_v31 = vpop.f32.mrb[11].mxu1 }
 0xcc2   :  { %2784 = vtanh.f32 %v813_v28 }
 0xccc   :  { %v2785_v33 = vpop.eup %2784 }
 0xccd   :  { %v815_v34 = vmul.f32 %v2785_v33, %v3258_v22 }
 0xccf   :  { %v816_v35 = vadd.f32 %v815_v34, %v3263_v27 }
 0xcd1   :  { %819 = vrot.lane.b32.xlu0 %v816_v35, %s2904_s0  ;;  %v817_v6 = vmul.f32 %v816_v35, %v746_v62 }
 0xd43   :  { %v820_v36 = vpop.permute.xlu0 %819 }
 0xd44   :  { %v822_v39 = vmul.f32 %v820_v36, %v816_v35 }
 0xd46   :  { %824 = vrot.lane.b32.xlu1 %v822_v39, %s2904_s0 }
 0xdb8   :  { %v825_v7 = vpop.permute.xlu1 %824 }
 0xdb9   :  { %v827_v29 = vadd.f32 %v825_v7, %v817_v6 }
 0xdbb   :  { %2786 = vtanh.f32 %v827_v29 }
 0xdc5   :  { %v2787_v30 = vpop.eup %2786 }
 0xdc6   :  { %830 = vrot.lane.b32.xlu0 %v2787_v30, %s2904_s0 }
 0xe38   :  { %v831_v37 = vpop.permute.xlu0 %830 }
 0xe39   :  { %v833_v38 = vmul.f32 %v831_v37, %v816_v35 }
 0xe3b   :  { %840 = vrot.lane.b32.xlu0 %v833_v38, %s2908_s16  ;;  %835 = vrot.lane.b32.xlu1 %v833_v38, %s2907_s5 }
 0xe3f   :  { %843 = vrot.lane.b32.xlu1 %v833_v38, %s2904_s0 }
 0xead   :  { %v841_v40 = vpop.permute.xlu0 %840  ;;  %v836_v41 = vpop.permute.xlu1 %835 }
 0xeae   :  { %839 = vst.msk [vmem:[#allocation3 + $0x8] sm:$0x3] %vm514_vm7, %v836_v41  ;;  %v846_v42 = vsel %vm154_vm2, %v836_v41, %v841_v40 }
 0xeaf   :  { %v847_v43 = vsel %vm265_vm4, %v846_v42, %v833_v38  ;;  %v1054_v42 = vld [vmem:[#allocation2 + $0xe] sm:$0x3] }
 0xeb1   :  { %v844_v45 = vpop.permute.xlu1 %843 }
 0xeb2   :  { %v848_v46 = vsel %vm391_vm5, %v847_v43, %v844_v45 }
 0xeb3   :  { %v849_v48 = vmul.f32 %v848_v46, %v3208_v44 }
 0xeb5   :  { %v850_v49 = vpack.c.bf16 %v849_v48, %v849_v48 }
 0xeb7   :  { %2504 = vmatmul.mubr.bf16.vlgmr.msra.gmra.mrb[12].mxu0 %v850_v49 }
 0xeb8   :  { %2528 = vmatpush3.bf16.msra.mxu0 %v3046_v8  ;;  %2543 = vmatprep.mubr.msk.bf16.mxu0 %vm2906_vm0, %v2903_v9 }
 0xeb9   :  { %2529 = vmatprep.subr.bf16.mxu0 %v2903_v9 }
 0xebc   :  { %2530 = vmatpush3.bf16.msra.mxu0 %v3059_v10  ;;  %v892_v10 = vld [vmem:[#allocation2 + $0xa] sm:$0x3] }
 0xebd   :  { %2531 = vmatprep.subr.bf16.mxu0 %v2903_v9 }
 0xec0   :  { %2532 = vmatpush3.bf16.msra.mxu0 %v3070_v11 }
 0xec1   :  { %2533 = vmatprep.subr.bf16.mxu0 %v2903_v9 }
 0xec4   :  { %2534 = vmatpush3.bf16.msra.mxu0 %v3084_v13 }
 0xec5   :  { %2535 = vmatprep.subr.bf16.mxu0 %v2903_v9 }
 0xec8   :  { %2536 = vmatpush3.bf16.msra.mxu0 %v3099_v15 }
 0xec9   :  { %2537 = vmatprep.subr.bf16.mxu0 %v2903_v9 }
 0xecc   :  { %2538 = vmatpush3.bf16.msra.mxu0 %v3112_v17 }
 0xecd   :  { %2539 = vmatprep.subr.bf16.mxu0 %v2903_v9 }
 0xed0   :  { %2540 = vmatpush3.bf16.msra.mxu0 %v3125_v19 }
 0xed1   :  { %2541 = vmatprep.subr.bf16.mxu0 %v2903_v9 }
 0xed4   :  { %2542 = vmatpush3.bf16.msra.mxu0 %v3136_v20 }
 0xed5   :  { %2567 = vmatprep.subr.bf16.mxu0 %v2903_v9 }
 0xf8a   :  { %v885_v8 = vpop.f32.mrb[12].mxu0 }
 0xf8b   :  { %v893_v11 = vadd.f32 %v892_v10, %v885_v8  ;;  %v2505_v13 = vpop.f32.mrb[13].mxu0 }
 0xf8c   :  { %v888_v21 = vpop.f32.mrb[14].mxu0 }
 0xf8d   :  { %v894_v15 = vmul.f32 %v893_v11, %v3258_v22  ;;  %v2506_v50 = vpop.f32.mrb[15].mxu0 }
 0xf8f   :  { %2788 = vtanh.f32 %v894_v15 }
 0xf99   :  { %v2789_v17 = vpop.eup %2788 }
 0xf9a   :  { %v896_v51 = vmul.f32 %v2789_v17, %v3258_v22 }
 0xf9c   :  { %v897_v19 = vadd.f32 %v896_v51, %v3263_v27  ;;  %v3465_v51 = vld [vmem:[#allocation3] sm:$0x3] }
 0xf9e   :  { %900 = vrot.lane.b32.xlu0 %v897_v19, %s2904_s0  ;;  %v898_v53 = vmul.f32 %v897_v19, %v827_v29 }
0x1010   :  { %v901_v52 = vpop.permute.xlu0 %900 }
0x1011   :  { %v903_v20 = vmul.f32 %v901_v52, %v897_v19  ;;  %v3473_v52 = vld [vmem:[#allocation3 + $0x8] sm:$0x3] }
0x1013   :  { %905 = vrot.lane.b32.xlu1 %v903_v20, %s2904_s0 }
0x1085   :  { %v906_v54 = vpop.permute.xlu1 %905 }
0x1086   :  { %v908_v55 = vadd.f32 %v906_v54, %v898_v53 }
0x1088   :  { %2790 = vtanh.f32 %v908_v55 }
0x1092   :  { %v2791_v56 = vpop.eup %2790 }
0x1093   :  { %911 = vrot.lane.b32.xlu0 %v2791_v56, %s2904_s0  ;;  %v3507_v56 = vld [vmem:[#allocation3 + $0x6] sm:$0x3] }
0x1105   :  { %v912_v57 = vpop.permute.xlu0 %911 }
0x1106   :  { %v914_v58 = vmul.f32 %v912_v57, %v897_v19  ;;  %v3469_v19 = vld [vmem:[#allocation3 + $0x4] sm:$0x3] }
0x1108   :  { %921 = vrot.lane.b32.xlu0 %v914_v58, %s2908_s16  ;;  %916 = vrot.lane.b32.xlu1 %v914_v58, %s2907_s5 }
0x110c   :  { %924 = vrot.lane.b32.xlu1 %v914_v58, %s2904_s0 }
0x117a   :  { %v922_v59 = vpop.permute.xlu0 %921  ;;  %v917_v60 = vpop.permute.xlu1 %916 }
0x117b   :  { %920 = vst.msk [vmem:[#allocation3 + $0xa] sm:$0x3] %vm514_vm7, %v917_v60  ;;  %v927_v61 = vsel %vm154_vm2, %v917_v60, %v922_v59  ;;  %v2753_v59 = vld [vmem:[%s3991_s7] sm:$0xff]   ;;  %v3535_v60 = vld [vmem:[%s3994_s10 + $0x8] sm:$0xff]  }
0x117c   :  { %v928_v62 = vsel %vm265_vm4, %v927_v61, %v914_v58  ;;  %v3526_v58 = vld [vmem:[%s3994_s10] sm:$0xff]   ;;  %v2755_v61 = vld [vmem:[%s3991_s7 + $0x8] sm:$0xff]  }
0x117e   :  { %v925_v63 = vpop.permute.xlu1 %924 }
0x117f   :  { %v929_v0 = vsel %vm391_vm5, %v928_v62, %v925_v63  ;;  %v3548_v62 = vld [vmem:[%s3994_s10 + $0x10] sm:$0xff]  }
0x1180   :  { %v930_v1 = vmul.f32 %v929_v0, %v3208_v44  ;;  %v2757_v63 = vld [vmem:[%s3991_s7 + $0x10] sm:$0xff]   ;;  %v3561_v0 = vld [vmem:[%s3994_s10 + $0x18] sm:$0xff]  }
0x1182   :  { %v931_v2 = vpack.c.bf16 %v930_v1, %v930_v1  ;;  %v3511_v57 = vld [vmem:[#allocation3 + $0xa] sm:$0x3] }
0x1183   :  { %v2759_v1 = vld [vmem:[%s3991_s7 + $0x18] sm:$0xff]  }
0x1184   :  { %2524 = vmatmul.mubr.bf16.vlgmr.msra.gmra.mrb[12].mxu1 %v931_v2  ;;  %v3573_v2 = vld [vmem:[%s3994_s10 + $0x20] sm:$0xff]  }
0x1185   :  { %2563 = vmatprep.mubr.msk.bf16.mxu1 %vm2906_vm0, %v2903_v9  ;;  %2548 = vmatpush3.bf16.msra.mxu1 %v2753_v59 }
0x1186   :  { %2549 = vmatprep.subr.bf16.mxu1 %v2903_v9 }
0x1189   :  { %2550 = vmatpush3.bf16.msra.mxu1 %v2755_v61 }
0x118a   :  { %2551 = vmatprep.subr.bf16.mxu1 %v2903_v9 }
0x118d   :  { %2552 = vmatpush3.bf16.msra.mxu1 %v2757_v63 }
0x118e   :  { %2553 = vmatprep.subr.bf16.mxu1 %v2903_v9 }
0x1191   :  { %2554 = vmatpush3.bf16.msra.mxu1 %v2759_v1 }
0x1192   :  { %2555 = vmatprep.subr.bf16.mxu1 %v2903_v9 }
0x1257   :  { %v966_v3 = vpop.f32.mrb[12].mxu1 }
0x1258   :  { %v974_v5 = vadd.f32 %v973_v4, %v966_v3  ;;  %v2525_v47 = vpop.f32.mrb[13].mxu1  ;;  %v2761_v3 = vld [vmem:[%s3991_s7 + $0x20] sm:$0xff]  }
0x1259   :  { %v969_v12 = vpop.f32.mrb[14].mxu1  ;;  %2556 = vmatpush3.bf16.msra.mxu1 %v2761_v3  ;;  %v2763_v47 = vld [vmem:[%s3991_s7 + $0x28] sm:$0xff]  }
0x125a   :  { %v975_v14 = vmul.f32 %v974_v5, %v3258_v22  ;;  %v2526_v16 = vpop.f32.mrb[15].mxu1  ;;  %v3586_v5 = vld [vmem:[%s3994_s10 + $0x28] sm:$0xff]   ;;  %2557 = vmatprep.subr.bf16.mxu1 %v2903_v9  ;;  %v3601_v12 = vld [vmem:[%s3994_s10 + $0x30] sm:$0xff]  }
0x125c   :  { %2792 = vtanh.f32 %v975_v14  ;;  %v2765_v14 = vld [vmem:[%s3991_s7 + $0x30] sm:$0xff]  }
0x125d   :  { %2558 = vmatpush3.bf16.msra.mxu1 %v2763_v47 }
0x125e   :  { %2559 = vmatprep.subr.bf16.mxu1 %v2903_v9 }
0x1261   :  { %2560 = vmatpush3.bf16.msra.mxu1 %v2765_v14 }
0x1262   :  { %2561 = vmatprep.subr.bf16.mxu1 %v2903_v9 }
0x1266   :  { %v2793_v18 = vpop.eup %2792 }
0x1267   :  { %v977_v23 = vmul.f32 %v2793_v18, %v3258_v22  ;;  %v3614_v18 = vld [vmem:[%s3994_s10 + $0x38] sm:$0xff]  }
0x1269   :  { %v978_v24 = vadd.f32 %v977_v23, %v3263_v27  ;;  %v2767_v23 = vld [vmem:[%s3991_s7 + $0x38] sm:$0xff]  }
0x126a   :  { %2562 = vmatpush3.bf16.msra.mxu1 %v2767_v23 }
0x126b   :  { %981 = vrot.lane.b32.xlu0 %v978_v24, %s2904_s0  ;;  %v979_v28 = vmul.f32 %v978_v24, %v908_v55  ;;  %v3503_v55 = vld [vmem:[#allocation3 + $0x2] sm:$0x3]  ;;  %2587 = vmatprep.subr.bf16.mxu1 %v2903_v9 }
0x12dd   :  { %v982_v25 = vpop.permute.xlu0 %981 }
0x12de   :  { %v984_v26 = vmul.f32 %v982_v25, %v978_v24 }
0x12e0   :  { %986 = vrot.lane.b32.xlu1 %v984_v26, %s2904_s0 }
0x1352   :  { %v987_v31 = vpop.permute.xlu1 %986 }
0x1353   :  { %v989_v33 = vadd.f32 %v987_v31, %v979_v28 }
0x1355   :  { %2794 = vtanh.f32 %v989_v33 }
0x135f   :  { %v2795_v34 = vpop.eup %2794 }
0x1360   :  { %992 = vrot.lane.b32.xlu0 %v2795_v34, %s2904_s0 }
0x13d2   :  { %v993_v35 = vpop.permute.xlu0 %992 }
0x13d3   :  { %v995_v36 = vmul.f32 %v993_v35, %v978_v24 }
0x13d5   :  { %1002 = vrot.lane.b32.xlu0 %v995_v36, %s2908_s16  ;;  %997 = vrot.lane.b32.xlu1 %v995_v36, %s2907_s5 }
0x13d9   :  { %1005 = vrot.lane.b32.xlu1 %v995_v36, %s2904_s0 }
0x1447   :  { %v1003_v39 = vpop.permute.xlu0 %1002  ;;  %v998_v6 = vpop.permute.xlu1 %997 }
0x1448   :  { %1001 = vst.msk [vmem:[#allocation3 + $0xc] sm:$0x3] %vm514_vm7, %v998_v6  ;;  %v1008_v7 = vsel %vm154_vm2, %v998_v6, %v1003_v39 }
0x1449   :  { %v1009_v29 = vsel %vm265_vm4, %v1008_v7, %v995_v36 }
0x144b   :  { %v1006_v30 = vpop.permute.xlu1 %1005 }
0x144c   :  { %v1010_v37 = vsel %vm391_vm5, %v1009_v29, %v1006_v30 }
0x144d   :  { %v1011_v38 = vmul.f32 %v1010_v37, %v3208_v44 }
0x144f   :  { %v1012_v40 = vpack.c.bf16 %v1011_v38, %v1011_v38  ;;  %v3477_v20 = vld [vmem:[#allocation3 + $0xc] sm:$0x3] }
0x1451   :  { %2544 = vmatmul.mubr.bf16.vlgmr.msra.gmra.mrb[16].mxu0 %v1012_v40 }
0x1452   :  { %2583 = vmatprep.mubr.msk.bf16.mxu0 %vm2906_vm0, %v2903_v9  ;;  %2568 = vmatpush3.bf16.msra.mxu0 %v3526_v58 }
0x1453   :  { %2569 = vmatprep.subr.bf16.mxu0 %v2903_v9 }
0x1456   :  { %2570 = vmatpush3.bf16.msra.mxu0 %v3535_v60 }
0x1457   :  { %2571 = vmatprep.subr.bf16.mxu0 %v2903_v9 }
0x145a   :  { %2572 = vmatpush3.bf16.msra.mxu0 %v3548_v62 }
0x145b   :  { %2573 = vmatprep.subr.bf16.mxu0 %v2903_v9 }
0x145e   :  { %2574 = vmatpush3.bf16.msra.mxu0 %v3561_v0 }
0x145f   :  { %2575 = vmatprep.subr.bf16.mxu0 %v2903_v9 }
0x1462   :  { %2576 = vmatpush3.bf16.msra.mxu0 %v3573_v2 }
0x1463   :  { %2577 = vmatprep.subr.bf16.mxu0 %v2903_v9 }
0x1466   :  { %2578 = vmatpush3.bf16.msra.mxu0 %v3586_v5 }
0x1467   :  { %2579 = vmatprep.subr.bf16.mxu0 %v2903_v9 }
0x146a   :  { %2580 = vmatpush3.bf16.msra.mxu0 %v3601_v12 }
0x146b   :  { %2581 = vmatprep.subr.bf16.mxu0 %v2903_v9 }
0x146e   :  { %2582 = vmatpush3.bf16.msra.mxu0 %v3614_v18 }
0x146f   :  { %2607 = vmatprep.subr.bf16.mxu0 %v2903_v9 }
0x1524   :  { %v1047_v41 = vpop.f32.mrb[16].mxu0 }
0x1525   :  { %v1055_v43 = vadd.f32 %v1054_v42, %v1047_v41  ;;  %v2545_v45 = vpop.f32.mrb[17].mxu0 }
0x1526   :  { %v1050_v46 = vpop.f32.mrb[18].mxu0 }
0x1527   :  { %v1056_v48 = vmul.f32 %v1055_v43, %v3258_v22  ;;  %v2546_v49 = vpop.f32.mrb[19].mxu0 }
0x1529   :  { %2796 = vtanh.f32 %v1056_v48 }
0x1533   :  { %v2797_v8 = vpop.eup %2796 }
0x1534   :  { %v1058_v10 = vmul.f32 %v2797_v8, %v3258_v22 }
0x1536   :  { %v1059_v11 = vadd.f32 %v1058_v10, %v3263_v27 }
0x1538   :  { %1062 = vrot.lane.b32.xlu0 %v1059_v11, %s2904_s0  ;;  %v1060_v21 = vmul.f32 %v1059_v11, %v989_v33 }
0x15aa   :  { %v1063_v44 = vpop.permute.xlu0 %1062 }
0x15ab   :  { %v1065_v13 = vmul.f32 %v1063_v44, %v1059_v11 }
0x15ad   :  { %1067 = vrot.lane.b32.xlu1 %v1065_v13, %s2904_s0 }
0x161f   :  { %v1068_v15 = vpop.permute.xlu1 %1067 }
0x1620   :  { %v3461_v50 = vadd.f32 %v1068_v15, %v1060_v21 }
0x1622   :  { %2798 = vtanh.f32 %v3461_v50 }
0x162c   :  { %v2799_v17 = vpop.eup %2798 }
0x162d   :  { %1073 = vrot.lane.b32.xlu0 %v2799_v17, %s2904_s0 }
0x1631   :  { %1105 = vrot.lane.b32.xlu0 %v3465_v51, %s2904_s0 }
0x1635   :  { %1109 = vrot.lane.b32.xlu0 %v3469_v19, %s2904_s0 }
0x1639   :  { %1113 = vrot.lane.b32.xlu0 %v3473_v52, %s2904_s0 }
0x163d   :  { %1117 = vrot.lane.b32.xlu0 %v3477_v20, %s2904_s0 }
0x1641   :  { %1129 = vrot.lane.b32.xlu0 %v3465_v51, %s2907_s5 }
0x1645   :  { %1133 = vrot.lane.b32.xlu0 %v3469_v19, %s2907_s5 }
0x1649   :  { %1137 = vrot.lane.b32.xlu0 %v3473_v52, %s2907_s5 }
0x164d   :  { %1141 = vrot.lane.b32.xlu0 %v3477_v20, %s2907_s5 }
0x1651   :  { %1153 = vrot.lane.b32.xlu0 %v3465_v51, %s2908_s16 }
0x1655   :  { %1157 = vrot.lane.b32.xlu0 %v3469_v19, %s2908_s16 }
0x1659   :  { %1161 = vrot.lane.b32.xlu0 %v3473_v52, %s2908_s16 }
0x165d   :  { %1165 = vrot.lane.b32.xlu0 %v3477_v20, %s2908_s16 }
0x169f   :  { %v1074_v53 = vpop.permute.xlu0 %1073 }
0x16a0   :  { %v3497_v54 = vmul.f32 %v1074_v53, %v1059_v11  ;;  %v1201_v53 = vld [vmem:[%s3990_s6] sm:$0x3] }
0x16a2   :  { %1436 = vrot.lane.b32.xlu0 %v3497_v54, %s2908_s16  ;;  %1078 = vrot.lane.b32.xlu1 %v3497_v54, %s2907_s5 }
0x16a3   :  { %v1106_v24 = vpop.permute.xlu0 %1105 }
0x16a4   :  { %v1177_v44 = vsel %vm154_vm2, %v3465_v51, %v1106_v24 }
0x16a6   :  { %1107 = vrot.lane.b32.xlu1 %v3503_v55, %s2904_s0 }
0x16a7   :  { %v1110_v25 = vpop.permute.xlu0 %1109 }
0x16a8   :  { %v1179_v49 = vsel %vm154_vm2, %v3469_v19, %v1110_v25 }
0x16aa   :  { %1111 = vrot.lane.b32.xlu1 %v3507_v56, %s2904_s0 }
0x16ab   :  { %v1114_v26 = vpop.permute.xlu0 %1113 }
0x16ac   :  { %v1181_v19 = vsel %vm154_vm2, %v3473_v52, %v1114_v26 }
0x16ae   :  { %1115 = vrot.lane.b32.xlu1 %v3511_v57, %s2904_s0 }
0x16af   :  { %v1118_v31 = vpop.permute.xlu0 %1117 }
0x16b0   :  { %v1183_v1 = vsel %vm154_vm2, %v3477_v20, %v1118_v31 }
0x16b2   :  { %1131 = vrot.lane.b32.xlu1 %v3503_v55, %s2907_s5 }
0x16b3   :  { %v1130_v34 = vpop.permute.xlu0 %1129 }
0x16b6   :  { %1135 = vrot.lane.b32.xlu1 %v3507_v56, %s2907_s5 }
0x16b7   :  { %v1134_v36 = vpop.permute.xlu0 %1133 }
0x16b8   :  { %v1187_v13 = vsel %vm265_vm4, %v1179_v49, %v1134_v36 }
0x16ba   :  { %1139 = vrot.lane.b32.xlu1 %v3511_v57, %s2907_s5 }
0x16bb   :  { %v1138_v6 = vpop.permute.xlu0 %1137 }
0x16bc   :  { %v1189_v59 = vsel %vm265_vm4, %v1181_v19, %v1138_v6 }
0x16be   :  { %1155 = vrot.lane.b32.xlu1 %v3503_v55, %s2908_s16 }
0x16bf   :  { %v1142_v29 = vpop.permute.xlu0 %1141 }
0x16c0   :  { %v1191_v47 = vsel %vm265_vm4, %v1183_v1, %v1142_v29 }
0x16c2   :  { %1159 = vrot.lane.b32.xlu1 %v3507_v56, %s2908_s16 }
0x16c3   :  { %v1154_v37 = vpop.permute.xlu0 %1153 }
0x16c6   :  { %1163 = vrot.lane.b32.xlu1 %v3511_v57, %s2908_s16 }
0x16c7   :  { %v1158_v40 = vpop.permute.xlu0 %1157 }
0x16cb   :  { %v1162_v42 = vpop.permute.xlu0 %1161 }
0x16cc   :  { %v1197_v3 = vsel %vm391_vm5, %v1189_v59, %v1162_v42 }
0x16cf   :  { %v1166_v21 = vpop.permute.xlu0 %1165 }
0x16d0   :  { %v1199_v26 = vsel %vm391_vm5, %v1191_v47, %v1166_v21 }
0x16d1   :  { %v1208_v6 = vmul.f32 %v1201_v53, %v1199_v26 }
0x1714   :  { %v3581_v4 = vpop.permute.xlu1 %1078  ;;  %v1437_v23 = vpop.permute.xlu0 %1436 }
0x1715   :  { %1082 = vst.msk [vmem:[#allocation3 + $0xe] sm:$0x3] %vm514_vm7, %v3581_v4  ;;  %1083 = vst.msk [vmem:[#allocation6] sm:$0x3] %vm514_vm7, %v3581_v4  ;;  %v1442_v36 = vsel %vm154_vm2, %v3581_v4, %v1437_v23 }
0x1718   :  { %v1108_v28 = vpop.permute.xlu1 %1107 }
0x1719   :  { %v1178_v8 = vsel %vm154_vm2, %v3503_v55, %v1108_v28  ;;  %v1195_v55 = vsel %vm391_vm5, %v1187_v13, %v1158_v40 }
0x171a   :  { %v1204_v14 = vmul.f32 %v1201_v53, %v1195_v55 }
0x171c   :  { %v3609_v16 = vld [vmem:[#allocation3 + $0xe] sm:$0x3]  ;;  %v1112_v33 = vpop.permute.xlu1 %1111 }
0x171d   :  { %1119 = vrot.lane.b32.xlu1 %v3609_v16, %s2904_s0  ;;  %v1180_v45 = vsel %vm154_vm2, %v3507_v56, %v1112_v33 }
0x1720   :  { %v1116_v35 = vpop.permute.xlu1 %1115 }
0x1721   :  { %1143 = vrot.lane.b32.xlu1 %v3609_v16, %s2907_s5  ;;  %v1182_v10 = vsel %vm154_vm2, %v3511_v57, %v1116_v35  ;;  %v1185_v57 = vsel %vm265_vm4, %v1177_v44, %v1130_v34  ;;  %v1206_v34 = vmul.f32 %v1201_v53, %v1197_v3 }
0x1722   :  { %v1193_v52 = vsel %vm391_vm5, %v1185_v57, %v1154_v37  ;;  %v3671_v37 = vld [vmem:[%s3993_s9] sm:$0x3] }
0x1723   :  { %v1202_v33 = vmul.f32 %v1201_v53, %v1193_v52 }
0x1724   :  { %v1132_v39 = vpop.permute.xlu1 %1131 }
0x1725   :  { %1167 = vrot.lane.b32.xlu1 %v3609_v16, %s2908_s16  ;;  %v1186_v15 = vsel %vm265_vm4, %v1178_v8, %v1132_v39 }
0x1728   :  { %v1136_v7 = vpop.permute.xlu1 %1135 }
0x1729   :  { %1439 = vrot.lane.b32.xlu1 %v3497_v54, %s2904_s0  ;;  %v1188_v46 = vsel %vm265_vm4, %v1180_v45, %v1136_v7 }
0x172c   :  { %v1140_v30 = vpop.permute.xlu1 %1139 }
0x172d   :  { %v1190_v17 = vsel %vm265_vm4, %v1182_v10, %v1140_v30 }
0x1730   :  { %v1156_v38 = vpop.permute.xlu1 %1155 }
0x1731   :  { %v1194_v56 = vsel %vm391_vm5, %v1186_v15, %v1156_v38 }
0x1732   :  { %v1203_v24 = vmul.f32 %v1201_v53, %v1194_v56 }
0x1734   :  { %v1160_v41 = vpop.permute.xlu1 %1159  ;;  %v1218_v7 = vcombine.low %v1202_v33, %v1203_v24 }
0x1735   :  { %v1196_v11 = vsel %vm391_vm5, %v1188_v46, %v1160_v41  ;;  %v1443_v41 = vsel %vm265_vm4, %v1442_v36, %v3497_v54 }
0x1736   :  { %v1205_v61 = vmul.f32 %v1201_v53, %v1196_v11  ;;  %v1226_v42 = vrot.slane %v1218_v7, %v3194_v32  ;;  %v2196_v11 = vld [vmem:[%s3992_s8] ss:$0 sm:$0xff]  ;;  %s2911_s8 = smov [#allocation6]  }
0x1737   :  { %s2148_s11 = sshll.u32 %s2911_s8, 4  ;;  %s2149_s11 = int_to_ptr.vmem [resolvable:$true] %s2148_s11 }
0x1738   :  { %v1164_v43 = vpop.permute.xlu1 %1163  ;;  %v1219_v35 = vcombine.low %v1204_v14, %v1205_v61  ;;  %p2837_p1 = scmp.lt.s32.totalorder %s2149_s11, %s2149_s11 }
0x1739   :  { %v1198_v51 = vsel %vm391_vm5, %v1190_v17, %v1164_v43 }
0x173a   :  { %v1207_v25 = vmul.f32 %v1201_v53, %v1198_v51 }
0x173c   :  { %v1235_v29 = vcombine.low %v1206_v34, %v1207_v25 }
0x173e   :  { %v1243_v43 = vrot.slane %v1235_v29, %v3194_v32 }
0x178f   :  { %v1120_v48 = vpop.permute.xlu1 %1119 }
0x1790   :  { %v1184_v28 = vsel %vm154_vm2, %v3609_v16, %v1120_v48  ;;  %v1233_v16 = vrot.slane %v1219_v35, %v3194_v32 }
0x1792   :  { %v1234_v48 = vcombine.low %v1226_v42, %v1233_v16 }
0x1793   :  { %v1144_v63 = vpop.permute.xlu1 %1143 }
0x1794   :  { %v1192_v20 = vsel %vm265_vm4, %v1184_v28, %v1144_v63 }
0x1797   :  { %v1168_v31 = vpop.permute.xlu1 %1167 }
0x1798   :  { %v1200_v39 = vsel %vm391_vm5, %v1192_v20, %v1168_v31 }
0x1799   :  { %v1209_v30 = vmul.f32 %v1201_v53, %v1200_v39 }
0x179b   :  { %v1236_v38 = vcombine.low %v1208_v6, %v1209_v30  ;;  %v1440_v40 = vpop.permute.xlu1 %1439 }
0x179c   :  { %v1444_v4 = vsel %vm391_vm5, %v1443_v41, %v1440_v40 }
0x179d   :  { %v1250_v45 = vrot.slane %v1236_v38, %v3194_v32  ;;  %v1445_v46 = vmul.f32 %v1444_v4, %v3671_v37 }
0x179f   :  { %v1251_v49 = vcombine.low %v1243_v43, %v1250_v45  ;;  %v1446_v8 = vpack.c.bf16 %v1445_v46, %v1445_v46 }
0x17a1   :  { %2584 = vmatmul.mubr.bf16.vlgmr.msra.gmra.mrb[20].mxu0 %v1446_v8  ;;  %v1254_v10 = vpack.c.bf16 %v1251_v49, %v1234_v48 }
0x17a2   :  { %2608 = vmatpush3.bf16.msra.mxu0 %v3526_v58  ;;  %2623 = vmatprep.mubr.msk.bf16.mxu0 %vm2906_vm0, %v2903_v9 }
0x17a3   :  { %2564 = vmatmul.mubr.bf16.vlgmr.msra.gmra.mrb[16].mxu1 %v1254_v10  ;;  %2609 = vmatprep.subr.bf16.mxu0 %v2903_v9 }
0x17a4   :  { %2588 = vmatpush3.bf16.msra.mxu1 %v3526_v58  ;;  %2603 = vmatprep.mubr.msk.bf16.mxu1 %vm2906_vm0, %v2903_v9 }
0x17a5   :  { %2589 = vmatprep.subr.bf16.mxu1 %v2903_v9 }
0x17a6   :  { %2610 = vmatpush3.bf16.msra.mxu0 %v3535_v60 }
0x17a7   :  { %2611 = vmatprep.subr.bf16.mxu0 %v2903_v9 }
0x17a8   :  { %2590 = vmatpush3.bf16.msra.mxu1 %v3535_v60 }
0x17a9   :  { %2591 = vmatprep.subr.bf16.mxu1 %v2903_v9 }
0x17aa   :  { %2612 = vmatpush3.bf16.msra.mxu0 %v3548_v62 }
0x17ab   :  { %2613 = vmatprep.subr.bf16.mxu0 %v2903_v9 }
0x17ac   :  { %2592 = vmatpush3.bf16.msra.mxu1 %v3548_v62 }
0x17ad   :  { %2593 = vmatprep.subr.bf16.mxu1 %v2903_v9 }
0x17ae   :  { %2614 = vmatpush3.bf16.msra.mxu0 %v3561_v0 }
0x17af   :  { %2615 = vmatprep.subr.bf16.mxu0 %v2903_v9 }
0x17b0   :  { %2594 = vmatpush3.bf16.msra.mxu1 %v3561_v0 }
0x17b1   :  { %2595 = vmatprep.subr.bf16.mxu1 %v2903_v9 }
0x17b2   :  { %2616 = vmatpush3.bf16.msra.mxu0 %v3573_v2 }
0x17b3   :  { %2617 = vmatprep.subr.bf16.mxu0 %v2903_v9 }
0x17b4   :  { %2596 = vmatpush3.bf16.msra.mxu1 %v3573_v2 }
0x17b5   :  { %2597 = vmatprep.subr.bf16.mxu1 %v2903_v9 }
0x17b6   :  { %2618 = vmatpush3.bf16.msra.mxu0 %v3586_v5 }
0x17b7   :  { %2619 = vmatprep.subr.bf16.mxu0 %v2903_v9 }
0x17b8   :  { %2598 = vmatpush3.bf16.msra.mxu1 %v3586_v5 }
0x17b9   :  { %2599 = vmatprep.subr.bf16.mxu1 %v2903_v9 }
0x17ba   :  { %2620 = vmatpush3.bf16.msra.mxu0 %v3601_v12 }
0x17bb   :  { %2621 = vmatprep.subr.bf16.mxu0 %v2903_v9 }
0x17bc   :  { %2600 = vmatpush3.bf16.msra.mxu1 %v3601_v12 }
0x17bd   :  { %2601 = vmatprep.subr.bf16.mxu1 %v2903_v9 }
0x17be   :  { %2622 = vmatpush3.bf16.msra.mxu0 %v3614_v18 }
0x17bf   :  { %2647 = vmatprep.subr.bf16.mxu0 %v2903_v9 }
0x17c0   :  { %2602 = vmatpush3.bf16.msra.mxu1 %v3614_v18 }
0x17c1   :  { %2627 = vmatprep.subr.bf16.mxu1 %v2903_v9 }
0x1874   :  { %v1529_v54 = vpop.f32.mrb[20].mxu0 }
0x1875   :  { %v2585_v44 = vpop.f32.mrb[21].mxu0 }
0x1876   :  { %v1360_v13 = vpop.f32.mrb[16].mxu1  ;;  %v1532_v21 = vpop.f32.mrb[22].mxu0 }
0x1877   :  { %v1361_v15 = vadd.f32 %v2196_v11, %v1360_v13  ;;  %v2565_v17 = vpop.f32.mrb[17].mxu1  ;;  %v2586_v19 = vpop.f32.mrb[23].mxu0 }
0x1878   :  { %v1363_v53 = vpop.f32.mrb[18].mxu1 }
0x1879   :  { %v1369_v55 = vcombine.high %v1361_v15, %v1361_v15  ;;  %v1376_v56 = vrot.slane %v1361_v15, %v3194_v32  ;;  %2205 = vst.sshfl [vmem:[#allocation2] sm:$0x3 pattern:$0x76325410] %v1361_v15  ;;  %v1364_v51 = vadd.f32 %v2196_v11, %v1363_v53  ;;  %v2566_v57 = vpop.f32.mrb[19].mxu1 }
0x187b   :  { %v1383_v59 = vrot.slane %v1369_v55, %v3194_v32  ;;  %v1384_v61 = vcombine.high %v1376_v56, %v1376_v56  ;;  %2206 = vst.sshfl [vmem:[#allocation2 + $0x4] sm:$0x3 pattern:$0x76325410] %v1369_v55  ;;  %v1386_v63 = vcombine.high %v1364_v51, %v1364_v51  ;;  %v1393_v1 = vrot.slane %v1364_v51, %v3194_v32 }
0x187c   :  { %2207 = vst.sshfl [vmem:[#allocation2 + $0x8] sm:$0x3 pattern:$0x76325410] %v1364_v51 }
0x187d   :  { %v1385_v52 = vcombine.high %v1383_v59, %v1383_v59  ;;  %1412 = vst [vmem:[#allocation2 + $0x2] sm:$0x3] %v1384_v61  ;;  %v1400_v3 = vrot.slane %v1386_v63, %v3194_v32  ;;  %v1401_v47 = vcombine.high %v1393_v1, %v1393_v1  ;;  %2208 = vst.sshfl [vmem:[#allocation2 + $0xc] sm:$0x3 pattern:$0x76325410] %v1386_v63 }
0x187f   :  { %1414 = vst [vmem:[#allocation2 + $0x6] sm:$0x3] %v1385_v52  ;;  %v1402_v14 = vcombine.high %v1400_v3, %v1400_v3  ;;  %1416 = vst [vmem:[#allocation2 + $0xa] sm:$0x3] %v1401_v47 }
0x1880   :  { %v1535_v23 = vld [vmem:[#allocation2] sm:$0x3] }
0x1881   :  { %1418 = vst [vmem:[#allocation2 + $0xe] sm:$0x3] %v1402_v14  ;;  %v1536_v24 = vadd.f32 %v1535_v23, %v1529_v54 }
0x1882   :  { %v1694_v47 = vld [vmem:[#allocation2 + $0x4] sm:$0x3] }
0x1883   :  { %v1537_v25 = vmul.f32 %v1536_v24, %v3258_v22 }
0x1884   :  { %v1614_v43 = vld [vmem:[#allocation2 + $0x2] sm:$0x3] }
0x1885   :  { %2800 = vtanh.f32 %v1537_v25 }
0x188f   :  { %v2801_v26 = vpop.eup %2800 }
0x1890   :  { %v1539_v28 = vmul.f32 %v2801_v26, %v3258_v22 }
0x1892   :  { %v1540_v33 = vadd.f32 %v1539_v28, %v3263_v27 }
0x1894   :  { %1543 = vrot.lane.b32.xlu0 %v1540_v33, %s2904_s0  ;;  %v1541_v35 = vmul.f32 %v1540_v33, %v3461_v50 }
0x1906   :  { %v1544_v34 = vpop.permute.xlu0 %1543 }
0x1907   :  { %v1546_v32 = vmul.f32 %v1544_v34, %v1540_v33 }
0x1909   :  { %1548 = vrot.lane.b32.xlu1 %v1546_v32, %s2904_s0 }
0x197b   :  { %v1549_v20 = vpop.permute.xlu1 %1548 }
0x197c   :  { %v1551_v31 = vadd.f32 %v1549_v20, %v1541_v35 }
0x197e   :  { %2802 = vtanh.f32 %v1551_v31 }
0x1988   :  { %v2803_v36 = vpop.eup %2802 }
0x1989   :  { %1554 = vrot.lane.b32.xlu0 %v2803_v36, %s2904_s0 }
0x19fb   :  { %v1555_v39 = vpop.permute.xlu0 %1554 }
0x19fc   :  { %v1557_v6 = vmul.f32 %v1555_v39, %v1540_v33 }
0x19fe   :  { %1563 = vrot.lane.b32.xlu0 %v1557_v6, %s2908_s16  ;;  %1559 = vrot.lane.b32.xlu1 %v1557_v6, %s2907_s5 }
0x1a02   :  { %1566 = vrot.lane.b32.xlu1 %v1557_v6, %s2904_s0 }
0x1a70   :  { %v1564_v7 = vpop.permute.xlu0 %1563  ;;  %v1560_v29 = vpop.permute.xlu1 %1559 }
0x1a71   :  { %1562 = vst.msk [vmem:[#allocation4] sm:$0x3] %vm514_vm7, %v1560_v29  ;;  %v1569_v30 = vsel %vm154_vm2, %v1560_v29, %v1564_v7 }
0x1a72   :  { %v1570_v16 = vsel %vm265_vm4, %v1569_v30, %v1557_v6 }
0x1a74   :  { %v1567_v38 = vpop.permute.xlu1 %1566 }
0x1a75   :  { %v1571_v40 = vsel %vm391_vm5, %v1570_v16, %v1567_v38 }
0x1a76   :  { %v1572_v41 = vmul.f32 %v1571_v40, %v3671_v37 }
0x1a78   :  { %v1573_v4 = vpack.c.bf16 %v1572_v41, %v1572_v41 }
0x1a7a   :  { %2604 = vmatmul.mubr.bf16.vlgmr.msra.gmra.mrb[20].mxu1 %v1573_v4 }
0x1a7b   :  { %2628 = vmatpush3.bf16.msra.mxu1 %v3526_v58  ;;  %2643 = vmatprep.mubr.msk.bf16.mxu1 %vm2906_vm0, %v2903_v9 }
0x1a7c   :  { %2629 = vmatprep.subr.bf16.mxu1 %v2903_v9 }
0x1a7f   :  { %2630 = vmatpush3.bf16.msra.mxu1 %v3535_v60 }
0x1a80   :  { %2631 = vmatprep.subr.bf16.mxu1 %v2903_v9 }
0x1a83   :  { %2632 = vmatpush3.bf16.msra.mxu1 %v3548_v62 }
0x1a84   :  { %2633 = vmatprep.subr.bf16.mxu1 %v2903_v9 }
0x1a87   :  { %2634 = vmatpush3.bf16.msra.mxu1 %v3561_v0 }
0x1a88   :  { %2635 = vmatprep.subr.bf16.mxu1 %v2903_v9 }
0x1a8b   :  { %2636 = vmatpush3.bf16.msra.mxu1 %v3573_v2 }
0x1a8c   :  { %2637 = vmatprep.subr.bf16.mxu1 %v2903_v9 }
0x1a8f   :  { %2638 = vmatpush3.bf16.msra.mxu1 %v3586_v5 }
0x1a90   :  { %2639 = vmatprep.subr.bf16.mxu1 %v2903_v9 }
0x1a93   :  { %2640 = vmatpush3.bf16.msra.mxu1 %v3601_v12 }
0x1a94   :  { %2641 = vmatprep.subr.bf16.mxu1 %v2903_v9 }
0x1a97   :  { %2642 = vmatpush3.bf16.msra.mxu1 %v3614_v18 }
0x1a98   :  { %2667 = vmatprep.subr.bf16.mxu1 %v2903_v9 }
0x1b4d   :  { %v1608_v42 = vpop.f32.mrb[20].mxu1 }
0x1b4e   :  { %v1615_v45 = vadd.f32 %v1614_v43, %v1608_v42  ;;  %v2605_v46 = vpop.f32.mrb[21].mxu1 }
0x1b4f   :  { %v1611_v48 = vpop.f32.mrb[22].mxu1 }
0x1b50   :  { %v1616_v49 = vmul.f32 %v1615_v45, %v3258_v22  ;;  %v2606_v8 = vpop.f32.mrb[23].mxu1  ;;  %v1774_v45 = vld [vmem:[#allocation2 + $0x6] sm:$0x3] }
0x1b52   :  { %2804 = vtanh.f32 %v1616_v49 }
0x1b5c   :  { %v2805_v10 = vpop.eup %2804 }
0x1b5d   :  { %v1618_v54 = vmul.f32 %v2805_v10, %v3258_v22 }
0x1b5f   :  { %v1619_v11 = vadd.f32 %v1618_v54, %v3263_v27 }
0x1b61   :  { %1622 = vrot.lane.b32.xlu0 %v1619_v11, %s2904_s0  ;;  %v1620_v21 = vmul.f32 %v1619_v11, %v1551_v31 }
0x1bd3   :  { %v1623_v44 = vpop.permute.xlu0 %1622 }
0x1bd4   :  { %v1625_v13 = vmul.f32 %v1623_v44, %v1619_v11 }
0x1bd6   :  { %1627 = vrot.lane.b32.xlu1 %v1625_v13, %s2904_s0 }
0x1c48   :  { %v1628_v15 = vpop.permute.xlu1 %1627 }
0x1c49   :  { %v1630_v17 = vadd.f32 %v1628_v15, %v1620_v21 }
0x1c4b   :  { %2806 = vtanh.f32 %v1630_v17 }
0x1c55   :  { %v2807_v19 = vpop.eup %2806 }
0x1c56   :  { %1633 = vrot.lane.b32.xlu0 %v2807_v19, %s2904_s0 }
0x1cc8   :  { %v1634_v53 = vpop.permute.xlu0 %1633 }
0x1cc9   :  { %v1636_v55 = vmul.f32 %v1634_v53, %v1619_v11 }
0x1ccb   :  { %1643 = vrot.lane.b32.xlu0 %v1636_v55, %s2908_s16  ;;  %1638 = vrot.lane.b32.xlu1 %v1636_v55, %s2907_s5 }
0x1ccf   :  { %1646 = vrot.lane.b32.xlu1 %v1636_v55, %s2904_s0 }
0x1d3d   :  { %v1644_v56 = vpop.permute.xlu0 %1643  ;;  %v1639_v51 = vpop.permute.xlu1 %1638 }
0x1d3e   :  { %1642 = vst.msk [vmem:[#allocation4 + $0x2] sm:$0x3] %vm514_vm7, %v1639_v51  ;;  %v1649_v57 = vsel %vm154_vm2, %v1639_v51, %v1644_v56 }
0x1d3f   :  { %v1650_v59 = vsel %vm265_vm4, %v1649_v57, %v1636_v55 }
0x1d41   :  { %v1647_v61 = vpop.permute.xlu1 %1646 }
0x1d42   :  { %v1651_v63 = vsel %vm391_vm5, %v1650_v59, %v1647_v61 }
0x1d43   :  { %v1652_v1 = vmul.f32 %v1651_v63, %v3671_v37 }
0x1d45   :  { %v1653_v52 = vpack.c.bf16 %v1652_v1, %v1652_v1 }
0x1d47   :  { %2624 = vmatmul.mubr.bf16.vlgmr.msra.gmra.mrb[24].mxu0 %v1653_v52 }
0x1d48   :  { %2648 = vmatpush3.bf16.msra.mxu0 %v3526_v58  ;;  %2663 = vmatprep.mubr.msk.bf16.mxu0 %vm2906_vm0, %v2903_v9 }
0x1d49   :  { %2649 = vmatprep.subr.bf16.mxu0 %v2903_v9 }
0x1d4c   :  { %2650 = vmatpush3.bf16.msra.mxu0 %v3535_v60 }
0x1d4d   :  { %2651 = vmatprep.subr.bf16.mxu0 %v2903_v9 }
0x1d50   :  { %2652 = vmatpush3.bf16.msra.mxu0 %v3548_v62 }
0x1d51   :  { %2653 = vmatprep.subr.bf16.mxu0 %v2903_v9 }
0x1d54   :  { %2654 = vmatpush3.bf16.msra.mxu0 %v3561_v0 }
0x1d55   :  { %2655 = vmatprep.subr.bf16.mxu0 %v2903_v9 }
0x1d58   :  { %2656 = vmatpush3.bf16.msra.mxu0 %v3573_v2 }
0x1d59   :  { %2657 = vmatprep.subr.bf16.mxu0 %v2903_v9 }
0x1d5c   :  { %2658 = vmatpush3.bf16.msra.mxu0 %v3586_v5 }
0x1d5d   :  { %2659 = vmatprep.subr.bf16.mxu0 %v2903_v9 }
0x1d60   :  { %2660 = vmatpush3.bf16.msra.mxu0 %v3601_v12 }
0x1d61   :  { %2661 = vmatprep.subr.bf16.mxu0 %v2903_v9 }
0x1d64   :  { %2662 = vmatpush3.bf16.msra.mxu0 %v3614_v18 }
0x1d65   :  { %2687 = vmatprep.subr.bf16.mxu0 %v2903_v9 }
0x1e1a   :  { %v1688_v3 = vpop.f32.mrb[24].mxu0 }
0x1e1b   :  { %v1695_v14 = vadd.f32 %v1694_v47, %v1688_v3  ;;  %v2625_v23 = vpop.f32.mrb[25].mxu0 }
0x1e1c   :  { %v1691_v24 = vpop.f32.mrb[26].mxu0 }
0x1e1d   :  { %v1696_v25 = vmul.f32 %v1695_v14, %v3258_v22  ;;  %v2626_v26 = vpop.f32.mrb[27].mxu0  ;;  %v1854_v14 = vld [vmem:[#allocation2 + $0x8] sm:$0x3] }
0x1e1f   :  { %2808 = vtanh.f32 %v1696_v25 }
0x1e29   :  { %v2809_v28 = vpop.eup %2808 }
0x1e2a   :  { %v1698_v33 = vmul.f32 %v2809_v28, %v3258_v22 }
0x1e2c   :  { %v1699_v34 = vadd.f32 %v1698_v33, %v3263_v27 }
0x1e2e   :  { %1702 = vrot.lane.b32.xlu0 %v1699_v34, %s2904_s0  ;;  %v1700_v20 = vmul.f32 %v1699_v34, %v1630_v17 }
0x1ea0   :  { %v1703_v32 = vpop.permute.xlu0 %1702 }
0x1ea1   :  { %v1705_v35 = vmul.f32 %v1703_v32, %v1699_v34 }
0x1ea3   :  { %1707 = vrot.lane.b32.xlu1 %v1705_v35, %s2904_s0 }
0x1f15   :  { %v1708_v31 = vpop.permute.xlu1 %1707 }
0x1f16   :  { %v1710_v36 = vadd.f32 %v1708_v31, %v1700_v20 }
0x1f18   :  { %2810 = vtanh.f32 %v1710_v36 }
0x1f22   :  { %v2811_v39 = vpop.eup %2810 }
0x1f23   :  { %1713 = vrot.lane.b32.xlu0 %v2811_v39, %s2904_s0 }
0x1f95   :  { %v1714_v6 = vpop.permute.xlu0 %1713 }
0x1f96   :  { %v1716_v7 = vmul.f32 %v1714_v6, %v1699_v34 }
0x1f98   :  { %1723 = vrot.lane.b32.xlu0 %v1716_v7, %s2908_s16  ;;  %1718 = vrot.lane.b32.xlu1 %v1716_v7, %s2907_s5 }
0x1f9c   :  { %1726 = vrot.lane.b32.xlu1 %v1716_v7, %s2904_s0 }
0x200a   :  { %v1724_v29 = vpop.permute.xlu0 %1723  ;;  %v1719_v30 = vpop.permute.xlu1 %1718 }
0x200b   :  { %1722 = vst.msk [vmem:[#allocation4 + $0x4] sm:$0x3] %vm514_vm7, %v1719_v30  ;;  %v1729_v16 = vsel %vm154_vm2, %v1719_v30, %v1724_v29 }
0x200c   :  { %v1730_v38 = vsel %vm265_vm4, %v1729_v16, %v1716_v7 }
0x200e   :  { %v1727_v40 = vpop.permute.xlu1 %1726 }
0x200f   :  { %v1731_v41 = vsel %vm391_vm5, %v1730_v38, %v1727_v40 }
0x2010   :  { %v1732_v4 = vmul.f32 %v1731_v41, %v3671_v37 }
0x2012   :  { %v1733_v42 = vpack.c.bf16 %v1732_v4, %v1732_v4 }
0x2014   :  { %2644 = vmatmul.mubr.bf16.vlgmr.msra.gmra.mrb[24].mxu1 %v1733_v42 }
0x2015   :  { %2668 = vmatpush3.bf16.msra.mxu1 %v3526_v58  ;;  %2683 = vmatprep.mubr.msk.bf16.mxu1 %vm2906_vm0, %v2903_v9 }
0x2016   :  { %2669 = vmatprep.subr.bf16.mxu1 %v2903_v9 }
0x2019   :  { %2670 = vmatpush3.bf16.msra.mxu1 %v3535_v60 }
0x201a   :  { %2671 = vmatprep.subr.bf16.mxu1 %v2903_v9 }
0x201d   :  { %2672 = vmatpush3.bf16.msra.mxu1 %v3548_v62 }
0x201e   :  { %2673 = vmatprep.subr.bf16.mxu1 %v2903_v9 }
0x2021   :  { %2674 = vmatpush3.bf16.msra.mxu1 %v3561_v0 }
0x2022   :  { %2675 = vmatprep.subr.bf16.mxu1 %v2903_v9 }
0x2025   :  { %2676 = vmatpush3.bf16.msra.mxu1 %v3573_v2 }
0x2026   :  { %2677 = vmatprep.subr.bf16.mxu1 %v2903_v9 }
0x2029   :  { %2678 = vmatpush3.bf16.msra.mxu1 %v3586_v5 }
0x202a   :  { %2679 = vmatprep.subr.bf16.mxu1 %v2903_v9 }
0x202d   :  { %2680 = vmatpush3.bf16.msra.mxu1 %v3601_v12 }
0x202e   :  { %2681 = vmatprep.subr.bf16.mxu1 %v2903_v9 }
0x2031   :  { %2682 = vmatpush3.bf16.msra.mxu1 %v3614_v18 }
0x2032   :  { %2707 = vmatprep.subr.bf16.mxu1 %v2903_v9 }
0x20e7   :  { %v1768_v43 = vpop.f32.mrb[24].mxu1 }
0x20e8   :  { %v1775_v46 = vadd.f32 %v1774_v45, %v1768_v43  ;;  %v2645_v48 = vpop.f32.mrb[25].mxu1 }
0x20e9   :  { %v1771_v49 = vpop.f32.mrb[26].mxu1 }
0x20ea   :  { %v1776_v8 = vmul.f32 %v1775_v46, %v3258_v22  ;;  %v2646_v10 = vpop.f32.mrb[27].mxu1 }
0x20ec   :  { %2812 = vtanh.f32 %v1776_v8 }
0x20f6   :  { %v2813_v54 = vpop.eup %2812 }
0x20f7   :  { %v1778_v11 = vmul.f32 %v2813_v54, %v3258_v22 }
0x20f9   :  { %v1779_v44 = vadd.f32 %v1778_v11, %v3263_v27 }
0x20fb   :  { %1782 = vrot.lane.b32.xlu0 %v1779_v44, %s2904_s0  ;;  %v1780_v15 = vmul.f32 %v1779_v44, %v1710_v36 }
0x216d   :  { %v1783_v13 = vpop.permute.xlu0 %1782 }
0x216e   :  { %v1785_v21 = vmul.f32 %v1783_v13, %v1779_v44 }
0x2170   :  { %1787 = vrot.lane.b32.xlu1 %v1785_v21, %s2904_s0 }
0x21e2   :  { %v1788_v17 = vpop.permute.xlu1 %1787 }
0x21e3   :  { %v1790_v19 = vadd.f32 %v1788_v17, %v1780_v15 }
0x21e5   :  { %2814 = vtanh.f32 %v1790_v19 }
0x21ef   :  { %v2815_v53 = vpop.eup %2814 }
0x21f0   :  { %1793 = vrot.lane.b32.xlu0 %v2815_v53, %s2904_s0 }
0x2262   :  { %v1794_v55 = vpop.permute.xlu0 %1793 }
0x2263   :  { %v1796_v56 = vmul.f32 %v1794_v55, %v1779_v44 }
0x2265   :  { %1803 = vrot.lane.b32.xlu0 %v1796_v56, %s2908_s16  ;;  %1798 = vrot.lane.b32.xlu1 %v1796_v56, %s2907_s5 }
0x2269   :  { %1806 = vrot.lane.b32.xlu1 %v1796_v56, %s2904_s0 }
0x22d7   :  { %v1804_v51 = vpop.permute.xlu0 %1803  ;;  %v1799_v57 = vpop.permute.xlu1 %1798 }
0x22d8   :  { %1802 = vst.msk [vmem:[#allocation4 + $0x6] sm:$0x3] %vm514_vm7, %v1799_v57  ;;  %v1809_v59 = vsel %vm154_vm2, %v1799_v57, %v1804_v51  ;;  %v2014_v57 = vld [vmem:[#allocation2 + $0xc] sm:$0x3] }
0x22d9   :  { %v1810_v61 = vsel %vm265_vm4, %v1809_v59, %v1796_v56 }
0x22db   :  { %v1807_v63 = vpop.permute.xlu1 %1806 }
0x22dc   :  { %v1811_v1 = vsel %vm391_vm5, %v1810_v61, %v1807_v63 }
0x22dd   :  { %v1812_v52 = vmul.f32 %v1811_v1, %v3671_v37 }
0x22df   :  { %v1813_v3 = vpack.c.bf16 %v1812_v52, %v1812_v52 }
0x22e1   :  { %2664 = vmatmul.mubr.bf16.vlgmr.msra.gmra.mrb[28].mxu0 %v1813_v3 }
0x22e2   :  { %2688 = vmatpush3.bf16.msra.mxu0 %v3526_v58  ;;  %2703 = vmatprep.mubr.msk.bf16.mxu0 %vm2906_vm0, %v2903_v9 }
0x22e3   :  { %2689 = vmatprep.subr.bf16.mxu0 %v2903_v9 }
0x22e6   :  { %2690 = vmatpush3.bf16.msra.mxu0 %v3535_v60 }
0x22e7   :  { %2691 = vmatprep.subr.bf16.mxu0 %v2903_v9 }
0x22ea   :  { %2692 = vmatpush3.bf16.msra.mxu0 %v3548_v62 }
0x22eb   :  { %2693 = vmatprep.subr.bf16.mxu0 %v2903_v9 }
0x22ee   :  { %2694 = vmatpush3.bf16.msra.mxu0 %v3561_v0 }
0x22ef   :  { %2695 = vmatprep.subr.bf16.mxu0 %v2903_v9 }
0x22f2   :  { %2696 = vmatpush3.bf16.msra.mxu0 %v3573_v2 }
0x22f3   :  { %2697 = vmatprep.subr.bf16.mxu0 %v2903_v9 }
0x22f6   :  { %2698 = vmatpush3.bf16.msra.mxu0 %v3586_v5 }
0x22f7   :  { %2699 = vmatprep.subr.bf16.mxu0 %v2903_v9 }
0x22fa   :  { %2700 = vmatpush3.bf16.msra.mxu0 %v3601_v12 }
0x22fb   :  { %2701 = vmatprep.subr.bf16.mxu0 %v2903_v9 }
0x22fe   :  { %2702 = vmatpush3.bf16.msra.mxu0 %v3614_v18 }
0x23b4   :  { %v1848_v47 = vpop.f32.mrb[28].mxu0 }
0x23b5   :  { %v1855_v23 = vadd.f32 %v1854_v14, %v1848_v47  ;;  %v2665_v24 = vpop.f32.mrb[29].mxu0 }
0x23b6   :  { %v1851_v25 = vpop.f32.mrb[30].mxu0 }
0x23b7   :  { %v1856_v26 = vmul.f32 %v1855_v23, %v3258_v22  ;;  %v2666_v28 = vpop.f32.mrb[31].mxu0 }
0x23b9   :  { %2816 = vtanh.f32 %v1856_v26 }
0x23c3   :  { %v2817_v33 = vpop.eup %2816 }
0x23c4   :  { %v1858_v34 = vmul.f32 %v2817_v33, %v3258_v22 }
0x23c6   :  { %v1859_v32 = vadd.f32 %v1858_v34, %v3263_v27 }
0x23c8   :  { %1862 = vrot.lane.b32.xlu0 %v1859_v32, %s2904_s0  ;;  %v1860_v31 = vmul.f32 %v1859_v32, %v1790_v19 }
0x243a   :  { %v1863_v35 = vpop.permute.xlu0 %1862 }
0x243b   :  { %v1865_v20 = vmul.f32 %v1863_v35, %v1859_v32 }
0x243d   :  { %1867 = vrot.lane.b32.xlu1 %v1865_v20, %s2904_s0 }
0x24af   :  { %v1868_v36 = vpop.permute.xlu1 %1867 }
0x24b0   :  { %v1870_v39 = vadd.f32 %v1868_v36, %v1860_v31 }
0x24b2   :  { %2818 = vtanh.f32 %v1870_v39 }
0x24bc   :  { %v2819_v6 = vpop.eup %2818 }
0x24bd   :  { %1873 = vrot.lane.b32.xlu0 %v2819_v6, %s2904_s0 }
0x252f   :  { %v1874_v7 = vpop.permute.xlu0 %1873 }
0x2530   :  { %v1876_v29 = vmul.f32 %v1874_v7, %v1859_v32 }
0x2532   :  { %1883 = vrot.lane.b32.xlu0 %v1876_v29, %s2908_s16  ;;  %1878 = vrot.lane.b32.xlu1 %v1876_v29, %s2907_s5 }
0x2536   :  { %1886 = vrot.lane.b32.xlu1 %v1876_v29, %s2904_s0 }
0x25a4   :  { %v1884_v30 = vpop.permute.xlu0 %1883  ;;  %v1879_v16 = vpop.permute.xlu1 %1878 }
0x25a5   :  { %1882 = vst.msk [vmem:[#allocation4 + $0x8] sm:$0x3] %vm514_vm7, %v1879_v16  ;;  %v1889_v38 = vsel %vm154_vm2, %v1879_v16, %v1884_v30  ;;  %v2094_v16 = vld [vmem:[#allocation2 + $0xe] sm:$0x3] }
0x25a6   :  { %v1890_v40 = vsel %vm265_vm4, %v1889_v38, %v1876_v29 }
0x25a8   :  { %v1887_v41 = vpop.permute.xlu1 %1886 }
0x25a9   :  { %v1891_v4 = vsel %vm391_vm5, %v1890_v40, %v1887_v41 }
0x25aa   :  { %v1892_v42 = vmul.f32 %v1891_v4, %v3671_v37 }
0x25ac   :  { %v1893_v43 = vpack.c.bf16 %v1892_v42, %v1892_v42 }
0x25ae   :  { %2684 = vmatmul.mubr.bf16.vlgmr.msra.gmra.mrb[28].mxu1 %v1893_v43 }
0x25af   :  { %2708 = vmatpush3.bf16.msra.mxu1 %v3526_v58  ;;  %2723 = vmatprep.mubr.msk.bf16.mxu1 %vm2906_vm0, %v2903_v9 }
0x25b0   :  { %2709 = vmatprep.subr.bf16.mxu1 %v2903_v9 }
0x25b3   :  { %2710 = vmatpush3.bf16.msra.mxu1 %v3535_v60  ;;  %v1934_v60 = vld [vmem:[#allocation2 + $0xa] sm:$0x3] }
0x25b4   :  { %2711 = vmatprep.subr.bf16.mxu1 %v2903_v9 }
0x25b7   :  { %2712 = vmatpush3.bf16.msra.mxu1 %v3548_v62 }
0x25b8   :  { %2713 = vmatprep.subr.bf16.mxu1 %v2903_v9 }
0x25bb   :  { %2714 = vmatpush3.bf16.msra.mxu1 %v3561_v0 }
0x25bc   :  { %2715 = vmatprep.subr.bf16.mxu1 %v2903_v9 }
0x25bf   :  { %2716 = vmatpush3.bf16.msra.mxu1 %v3573_v2 }
0x25c0   :  { %2717 = vmatprep.subr.bf16.mxu1 %v2903_v9 }
0x25c3   :  { %2718 = vmatpush3.bf16.msra.mxu1 %v3586_v5 }
0x25c4   :  { %2719 = vmatprep.subr.bf16.mxu1 %v2903_v9 }
0x25c7   :  { %2720 = vmatpush3.bf16.msra.mxu1 %v3601_v12 }
0x25c8   :  { %2721 = vmatprep.subr.bf16.mxu1 %v2903_v9 }
0x25cb   :  { %2722 = vmatpush3.bf16.msra.mxu1 %v3614_v18 }
0x2681   :  { %v1928_v58 = vpop.f32.mrb[28].mxu1 }
0x2682   :  { %v1935_v62 = vadd.f32 %v1934_v60, %v1928_v58  ;;  %v2685_v0 = vpop.f32.mrb[29].mxu1 }
0x2683   :  { %v1931_v45 = vpop.f32.mrb[30].mxu1 }
0x2684   :  { %v1936_v46 = vmul.f32 %v1935_v62, %v3258_v22  ;;  %v2686_v2 = vpop.f32.mrb[31].mxu1 }
0x2686   :  { %2820 = vtanh.f32 %v1936_v46 }
0x2690   :  { %v2821_v48 = vpop.eup %2820 }
0x2691   :  { %v1938_v5 = vmul.f32 %v2821_v48, %v3258_v22 }
0x2693   :  { %v1939_v49 = vadd.f32 %v1938_v5, %v3263_v27 }
0x2695   :  { %1942 = vrot.lane.b32.xlu0 %v1939_v49, %s2904_s0  ;;  %v1940_v18 = vmul.f32 %v1939_v49, %v1870_v39 }
0x2707   :  { %v1943_v12 = vpop.permute.xlu0 %1942 }
0x2708   :  { %v1945_v9 = vmul.f32 %v1943_v12, %v1939_v49 }
0x270a   :  { %1947 = vrot.lane.b32.xlu1 %v1945_v9, %s2904_s0 }
0x277c   :  { %v1948_v8 = vpop.permute.xlu1 %1947 }
0x277d   :  { %v1950_v10 = vadd.f32 %v1948_v8, %v1940_v18 }
0x277f   :  { %2822 = vtanh.f32 %v1950_v10 }
0x2789   :  { %v2823_v54 = vpop.eup %2822 }
0x278a   :  { %1953 = vrot.lane.b32.xlu0 %v2823_v54, %s2904_s0 }
0x27fc   :  { %v1954_v11 = vpop.permute.xlu0 %1953 }
0x27fd   :  { %v1956_v44 = vmul.f32 %v1954_v11, %v1939_v49 }
0x27ff   :  { %1963 = vrot.lane.b32.xlu0 %v1956_v44, %s2908_s16  ;;  %1958 = vrot.lane.b32.xlu1 %v1956_v44, %s2907_s5 }
0x2803   :  { %1966 = vrot.lane.b32.xlu1 %v1956_v44, %s2904_s0 }
0x2871   :  { %v1964_v13 = vpop.permute.xlu0 %1963  ;;  %v1959_v21 = vpop.permute.xlu1 %1958 }
0x2872   :  { %1962 = vst.msk [vmem:[#allocation4 + $0xa] sm:$0x3] %vm514_vm7, %v1959_v21  ;;  %v1969_v15 = vsel %vm154_vm2, %v1959_v21, %v1964_v13 }
0x2873   :  { %v1970_v17 = vsel %vm265_vm4, %v1969_v15, %v1956_v44 }
0x2875   :  { %v1967_v19 = vpop.permute.xlu1 %1966 }
0x2876   :  { %v1971_v53 = vsel %vm391_vm5, %v1970_v17, %v1967_v19 }
0x2877   :  { %v1972_v55 = vmul.f32 %v1971_v53, %v3671_v37 }
0x2879   :  { %v1973_v56 = vpack.c.bf16 %v1972_v55, %v1972_v55 }
0x287b   :  { %2704 = vmatmul.mubr.bf16.vlgmr.msra.gmra.mrb[32].mxu0 %v1973_v56 }
0x294e   :  { %v2008_v51 = vpop.f32.mrb[32].mxu0 }
0x294f   :  { %v2015_v59 = vadd.f32 %v2014_v57, %v2008_v51  ;;  %v2705_v61 = vpop.f32.mrb[33].mxu0 }
0x2950   :  { %v2011_v63 = vpop.f32.mrb[34].mxu0 }
0x2951   :  { %v2016_v1 = vmul.f32 %v2015_v59, %v3258_v22  ;;  %v2706_v52 = vpop.f32.mrb[35].mxu0 }
0x2953   :  { %2824 = vtanh.f32 %v2016_v1 }
0x295d   :  { %v2825_v3 = vpop.eup %2824 }
0x295e   :  { %v2018_v47 = vmul.f32 %v2825_v3, %v3258_v22 }
0x2960   :  { %v2019_v14 = vadd.f32 %v2018_v47, %v3263_v27 }
0x2962   :  { %2022 = vrot.lane.b32.xlu0 %v2019_v14, %s2904_s0  ;;  %v2020_v25 = vmul.f32 %v2019_v14, %v1950_v10 }
0x29d4   :  { %v2023_v23 = vpop.permute.xlu0 %2022 }
0x29d5   :  { %v2025_v24 = vmul.f32 %v2023_v23, %v2019_v14 }
0x29d7   :  { %2027 = vrot.lane.b32.xlu1 %v2025_v24, %s2904_s0 }
0x2a49   :  { %v2028_v26 = vpop.permute.xlu1 %2027 }
0x2a4a   :  { %v2030_v28 = vadd.f32 %v2028_v26, %v2020_v25 }
0x2a4c   :  { %2826 = vtanh.f32 %v2030_v28 }
0x2a56   :  { %v2827_v33 = vpop.eup %2826 }
0x2a57   :  { %2033 = vrot.lane.b32.xlu0 %v2827_v33, %s2904_s0 }
0x2ac9   :  { %v2034_v34 = vpop.permute.xlu0 %2033 }
0x2aca   :  { %v2036_v32 = vmul.f32 %v2034_v34, %v2019_v14 }
0x2acc   :  { %2043 = vrot.lane.b32.xlu0 %v2036_v32, %s2908_s16  ;;  %2038 = vrot.lane.b32.xlu1 %v2036_v32, %s2907_s5 }
0x2ad0   :  { %2046 = vrot.lane.b32.xlu1 %v2036_v32, %s2904_s0 }
0x2b3e   :  { %v2044_v35 = vpop.permute.xlu0 %2043  ;;  %v2039_v20 = vpop.permute.xlu1 %2038 }
0x2b3f   :  { %2042 = vst.msk [vmem:[#allocation4 + $0xc] sm:$0x3] %vm514_vm7, %v2039_v20  ;;  %v2049_v31 = vsel %vm154_vm2, %v2039_v20, %v2044_v35 }
0x2b40   :  { %v2050_v36 = vsel %vm265_vm4, %v2049_v31, %v2036_v32 }
0x2b42   :  { %v2047_v39 = vpop.permute.xlu1 %2046 }
0x2b43   :  { %v2051_v6 = vsel %vm391_vm5, %v2050_v36, %v2047_v39 }
0x2b44   :  { %v2052_v7 = vmul.f32 %v2051_v6, %v3671_v37 }
0x2b46   :  { %v2053_v29 = vpack.c.bf16 %v2052_v7, %v2052_v7 }
0x2b48   :  { %2724 = vmatmul.mubr.bf16.vlgmr.msra.gmra.mrb[32].mxu1 %v2053_v29 }
0x2c1b   :  { %v2088_v30 = vpop.f32.mrb[32].mxu1 }
0x2c1c   :  { %v2095_v38 = vadd.f32 %v2094_v16, %v2088_v30  ;;  %v2725_v40 = vpop.f32.mrb[33].mxu1 }
0x2c1d   :  { %v2091_v41 = vpop.f32.mrb[34].mxu1 }
0x2c1e   :  { %v2096_v4 = vmul.f32 %v2095_v38, %v3258_v22  ;;  %v2726_v42 = vpop.f32.mrb[35].mxu1 }
0x2c20   :  { %2828 = vtanh.f32 %v2096_v4 }
0x2c2a   :  { %v2829_v43 = vpop.eup %2828 }
0x2c2b   :  { %v2098_v58 = vmul.f32 %v2829_v43, %v3258_v22 }
0x2c2d   :  { %v2099_v60 = vadd.f32 %v2098_v58, %v3263_v27 }
0x2c2f   :  { %2102 = vrot.lane.b32.xlu0 %v2099_v60, %s2904_s0  ;;  %v2100_v0 = vmul.f32 %v2099_v60, %v2030_v28 }
0x2ca1   :  { %v2103_v62 = vpop.permute.xlu0 %2102 }
0x2ca2   :  { %v2105_v37 = vmul.f32 %v2103_v62, %v2099_v60 }
0x2ca4   :  { %2107 = vrot.lane.b32.xlu1 %v2105_v37, %s2904_s0 }
0x2d16   :  { %v2108_v45 = vpop.permute.xlu1 %2107 }
0x2d17   :  { %v2110_v46 = vadd.f32 %v2108_v45, %v2100_v0 }
0x2d19   :  { %2830 = vtanh.f32 %v2110_v46 }
0x2d23   :  { %v2831_v2 = vpop.eup %2830 }
0x2d24   :  { %2113 = vrot.lane.b32.xlu0 %v2831_v2, %s2904_s0 }
0x2d28   :  { %1085 = vrot.lane.b32.xlu0 %v3461_v50, %s2908_s16 }
0x2d96   :  { %v2114_v48 = vpop.permute.xlu0 %2113 }
0x2d97   :  { %v2116_v22 = vmul.f32 %v2114_v48, %v2099_v60 }
0x2d99   :  { %2118 = vrot.lane.b32.xlu1 %v2116_v22, %s2907_s5  ;;  %s2832_s5 = scalar_lea.vmem %s2149_s11, 64 }
0x2d9a   :  { %v1086_v27 = vpop.permute.xlu0 %1085  ;;  %p2833_p0 = scmp.ne.s32.totalorder %s2149_s11, %s2832_s5  ;;  %p2838_p2 = scmp.lt.s32.totalorder %s2832_s5, %s2832_s5 }
0x2d9b   :  { %1088 = vst.msk [vmem:[#allocation8] sm:$0x3] %vm514_vm7, %v1086_v27 }
0x2d9c   :  { %p2839_p3 = por %p2838_p2, %p2837_p1 }
0x2d9d   :  { %2126 = vrot.lane.b32.xlu1 %v2110_v46, %s2908_s16 }
0x2d9e   :  { %p2840_p4 = pnand %p2839_p3, %p2833_p0 }
0x2e0b   :  { %v2119_v5 = vpop.permute.xlu1 %2118 }
0x2e0c   :  { %2122 = vst.msk [vmem:[#allocation4 + $0xe] sm:$0x3] %vm514_vm7, %v2119_v5  ;;  %2124 = vst.msk [vmem:[#allocation6 + $0x2] sm:$0x3] %vm514_vm7, %v2119_v5 }
0x2e0d   :  { %2843 = shalt.err (!%p2840_p4)
}
0x2e0e   :  { %s2844_s3 = scalar_lea.hbm %s3998_s14, 64 }
0x2e0f   :  { %p2845_p5 = scmp.ne.s32.totalorder %s3998_s14, %s2844_s3  ;;  %p2848_p6 = scmp.lt.u32.totalorder %s2844_s3, %s3998_s14 }
0x2e11   :  { %p2850_p7 = pnand %p2848_p6, %p2845_p5 }
0x2e13   :  { %2853 = shalt.err (!%p2850_p7)
}
0x2e14   :  { %s2914_s25 = smov 2   ;;  %s2854_s2 = scalar_lea.vmem %s3922_s1, 256 }
0x2e15   :  { %2154 = dma.vmem_to_hbm [thread:$0]  %s2149_s11, 64, %s3998_s14, [#allocation7], %s2904_s0, %s2904_s0, %s2914_s25  }
0x2e16   :  { %p2855_p8 = scmp.ne.s32.totalorder %s3922_s1, %s2854_s2  ;;  %p2859_p9 = scmp.lt.s32.totalorder %s3922_s1, %s3922_s1 }
0x2e17   :  { %p2860_p10 = scmp.lt.s32.totalorder %s2854_s2, %s2854_s2 }
0x2e19   :  { %p2861_p11 = por %p2860_p10, %p2859_p9 }
0x2e1b   :  { %p2862_p12 = pnand %p2861_p11, %p2855_p8 }
0x2e1d   :  { %2865 = shalt.err (!%p2862_p12)
}
0x2e1e   :  { %s2866_s30 = scalar_lea.hbm %s3997_s13, 256 }
0x2e1f   :  { %p2867_p13 = scmp.ne.s32.totalorder %s3997_s13, %s2866_s30  ;;  %p2870_p0 = scmp.lt.u32.totalorder %s2866_s30, %s3997_s13 }
0x2e21   :  { %p2872_p1 = pnand %p2870_p0, %p2867_p13 }
0x2e23   :  { %2875 = shalt.err (!%p2872_p1)
}
0x2e24   :  { %2142 = dma.vmem_to_hbm [thread:$0]  %s3922_s1, 256, %s3997_s13, [#allocation5], %s2904_s0, %s2904_s0, %s2914_s25   ;;  %v2127_v50 = vpop.permute.xlu1 %2126 }
0x2e25   :  { %2130 = vst.msk [vmem:[#allocation8 + $0x2] sm:$0x3] %vm514_vm7, %v2127_v50  ;;  %s2876_s18 = scalar_lea.vmem %s3926_s4, 64  ;;  %p2881_p3 = scmp.lt.s32.totalorder %s3926_s4, %s3926_s4 }
0x2e26   :  { %p2877_p2 = scmp.ne.s32.totalorder %s3926_s4, %s2876_s18  ;;  %p2882_p4 = scmp.lt.s32.totalorder %s2876_s18, %s2876_s18 }
0x2e28   :  { %p2883_p5 = por %p2882_p4, %p2881_p3 }
0x2e2a   :  { %p2884_p6 = pnand %p2883_p5, %p2877_p2 }
0x2e2c   :  { %2887 = shalt.err (!%p2884_p6)
}
0x2e2d   :  { %s2888_s12 = scalar_lea.hbm %s3999_s15, 64 }
0x2e2e   :  { %p2889_p7 = scmp.ne.s32.totalorder %s3999_s15, %s2888_s12  ;;  %p2892_p8 = scmp.lt.u32.totalorder %s2888_s12, %s3999_s15 }
0x2e30   :  { %p2894_p9 = pnand %p2892_p8, %p2889_p7 }
0x2e32   :  { %2897 = shalt.err (!%p2894_p9)
}
0x2e33   :  { %2166 = dma.vmem_to_hbm [thread:$0]  %s3926_s4, 64, %s3999_s15, [#allocation7], %s2904_s0, %s2904_s0, %s2914_s25  }
0x2e34   :  { %2898 = dma.done.wait [#allocation5], 256  }
0x2e35   :  { %2899 = vsyncadd [#allocation5], 4294967040 }
0x2e36   :  { %2900 = dma.done.wait [#allocation7], 128  }
0x2e37   :  { %2901 = vsyncadd [#allocation7], 4294967168 }
0x2e38   :  { %2176 = vsyncpa [#allocation5], 1 }
0x2e39   :  { %2177 = vsyncpa [#allocation7], 1 }

</bundles_post_ra>
